<compile_context>
chip_gen: v5e
topology: v5e:2x2
jax: 0.10.0
libtpu: 0.0.40
codegen_flags: <defaults>
</compile_context>

<pallas_src>
import jax
import jax.numpy as jnp
from jax.experimental import pallas as pl
from jax.experimental.pallas import tpu as pltpu


# Head layout inside the fused, lane-padded (256, 128) head matmul.
MU_DIM, KAPPA_DIM, C_DIM, GRIP_DIM = 3, 1, 3, 1
_O_MU = 0
_O_KAPPA = _O_MU + MU_DIM          # 3
_O_CMU = _O_KAPPA + KAPPA_DIM      # 4
_O_CLV = _O_CMU + C_DIM            # 7
_O_GRIP = _O_CLV + C_DIM           # 10
HEAD_DIM = _O_GRIP + GRIP_DIM      # 11
HEAD_PAD = 128                     # lane-dense head / output width


# ---------------------------------------------------------------------------
# Fused Pallas kernel: conv1 (K-tiled) -> relu -> conv2 -> relu -> heads.
# ---------------------------------------------------------------------------
def _vmf_encoder_kernel(x_ref, t1_ref, b1_ref, t2_ref, b2_ref, wh_ref, bh_ref,
                        out_ref, h1_acc):
    k = pl.program_id(1)

    @pl.when(k == 0)
    def _():
        h1_acc[...] = jnp.zeros_like(h1_acc)

    # conv1 (Toeplitz) partial product over the streamed K axis:
    # (bm, tk)bf16 @ (tk, n1)bf16 -> f32 accumulate in VMEM scratch.
    h1_acc[...] += jnp.dot(x_ref[...].astype(jnp.bfloat16), t1_ref[...],
                           preferred_element_type=jnp.float32)

    @pl.when(k == pl.num_programs(1) - 1)
    def _():
        # conv1 bias + ReLU.
        h1 = jnp.maximum(h1_acc[...] + b1_ref[...], 0.0)

        # conv2 (Toeplitz) + bias + ReLU : (bm, 512) @ (512, 256).
        h2 = jnp.dot(h1.astype(jnp.bfloat16), t2_ref[...],
                     preferred_element_type=jnp.float32)
        h2 = jnp.maximum(h2 + b2_ref[...], 0.0)

        # All five fc heads in ONE lane-dense matmul : (bm, 256) @ (256, 128).
        heads = jnp.dot(h2.astype(jnp.bfloat16), wh_ref[...],
                        preferred_element_type=jnp.float32) + bh_ref[...]

        col = jax.lax.broadcasted_iota(jnp.int32, heads.shape, 1)
        is_mu = col < _O_KAPPA
        is_kappa = col == _O_KAPPA

        # mu = F.normalize(fc_mu(h), dim=-1)  (eps = 1e-12, like PyTorch).
        mu_sq = jnp.where(is_mu, heads * heads, 0.0)
        norm = jnp.sqrt(jnp.sum(mu_sq, axis=-1, keepdims=True))
        mu_scaled = heads / jnp.maximum(norm, 1e-12)

        # kappa = softplus(fc_kappa(h)) + 1  (stable softplus; applying it to
        # the whole 128-lane row is cheap VPU/EUP filler, then lane-selected).
        sp = jnp.maximum(heads, 0.0) + jnp.log(1.0 + jnp.exp(-jnp.abs(heads)))

        # Single full-lane store; padded columns carry zeros.
        out_ref[...] = jnp.where(
            is_mu, mu_scaled,
            jnp.where(is_kappa, sp + 1.0, heads)).astype(out_ref.dtype)


def vmf_encoder_forward(kp, x_nchw, *, tk=256):
    """Forward of VMFEncoder (fc_c_mu / fc_c_logvar / fc_gripper present):
       returns (mu, kappa, c_mu, c_logvar, raw_gripper)."""
    B = x_nchw.shape[0]
    x_flat = x_nchw.reshape(B, -1).astype(jnp.float32)   # NCHW flatten: pure reshape
    n_in = x_flat.shape[1]
    n1 = kp["t1"].shape[1]
    n2 = kp["t2"].shape[1]
    nh = kp["w_heads"].shape[1]                          # 128 (lane-padded)
    assert n_in % tk == 0

    # Batch tiling: a "parallel" outer axis (sharded across v7x's 2 TCs for
    # large batches) and an "arbitrary" K axis streaming conv1's Toeplitz.
    bm = B if B <= 128 else 128
    Bp = pl.cdiv(B, bm) * bm
    if Bp != B:
        x_flat = jnp.pad(x_flat, ((0, Bp - B), (0, 0)))
    nb, nk = Bp // bm, n_in // tk

    out = pl.pallas_call(
        _vmf_encoder_kernel,
        out_shape=jax.ShapeDtypeStruct((Bp, nh), jnp.float32),
        grid=(nb, nk),
        in_specs=[
            pl.BlockSpec((bm, tk), lambda b, k: (b, k)),        # x: streamed along K
            pl.BlockSpec((tk, n1), lambda b, k: (k, 0)),        # T1: streamed (overlaps MXU)
            pl.BlockSpec((1, n1), lambda b, k: (0, 0)),         # conv1 bias
            pl.BlockSpec((n1, n2), lambda b, k: (0, 0)),        # T2 (VMEM-resident)
            pl.BlockSpec((1, n2), lambda b, k: (0, 0)),         # conv2 bias
            pl.BlockSpec((n2, nh), lambda b, k: (0, 0)),        # fused head weights (padded)
            pl.BlockSpec((1, nh), lambda b, k: (0, 0)),         # fused head bias (padded)
        ],
        out_specs=pl.BlockSpec((bm, nh), lambda b, k: (b, 0)),  # ONE lane-dense output
        scratch_shapes=[pltpu.VMEM((bm, n1), jnp.float32)],     # conv1 accumulator
        compiler_params=pltpu.CompilerParams(
            dimension_semantics=("parallel", "arbitrary")),
    )(x_flat, kp["t1"], kp["b1"], kp["t2"], kp["b2"],
      kp["w_heads"], kp["b_heads"])

    # Cheap fused XLA slices of the single lane-dense kernel output.
    mu = out[:B, _O_MU:_O_MU + MU_DIM]
    kappa = out[:B, _O_KAPPA:_O_KAPPA + KAPPA_DIM]
    c_mu = out[:B, _O_CMU:_O_CMU + C_DIM]
    c_logvar = out[:B, _O_CLV:_O_CLV + C_DIM]
    raw_gripper = out[:B, _O_GRIP:_O_GRIP + GRIP_DIM]
    return mu, kappa, c_mu, c_logvar, raw_gripper


# ---------------------------------------------------------------------------
# Init-time parameter construction (PyTorch-layout synthetic weights) and
# one-off folding into the fused-kernel representation.
# ---------------------------------------------------------------------------
def init_torch_like_params(key, in_ch=4, c1=8, c2=16, hw=16):
    ks = jax.random.split(key, 14)
    s = 0.1
    p = {}
    p["conv1_w"] = s * jax.random.normal(ks[0], (c1, in_ch, 3, 3), jnp.float32)  # OIHW
    p["conv1_b"] = s * jax.random.normal(ks[1], (c1,), jnp.float32)
    p["conv2_w"] = s * jax.random.normal(ks[2], (c2, c1, 3, 3), jnp.float32)
    p["conv2_b"] = s * jax.random.normal(ks[3], (c2,), jnp.float32)
    flat = c2 * (hw // 4) * (hw // 4)   # 16 * 4 * 4 = 256 after two stride-2 convs

    def lin(kw_, kb_, n):               # stored (in, out); PyTorch weight is (out, in).T
        return (s * jax.random.normal(kw_, (flat, n), jnp.float32),
                s * jax.random.normal(kb_, (n,), jnp.float32))

    p["fc_mu_w"], p["fc_mu_b"] = lin(ks[4], ks[5], MU_DIM)
    p["fc_kappa_w"], p["fc_kappa_b"] = lin(ks[6], ks[7], KAPPA_DIM)
    p["fc_c_mu_w"], p["fc_c_mu_b"] = lin(ks[8], ks[9], C_DIM)
    p["fc_c_logvar_w"], p["fc_c_logvar_b"] = lin(ks[10], ks[11], C_DIM)
    p["fc_gripper_w"], p["fc_gripper_b"] = lin(ks[12], ks[13], GRIP_DIM)
    return p


def _conv_to_toeplitz(w_oihw, in_hw, stride, pad):
    """Dense T such that (NCHW-flattened x) @ T == NCHW-flattened conv2d(x).
    Built once at init by pushing basis images through the conv (exact)."""
    cout, cin, kh, kw = w_oihw.shape
    h, w = in_hw
    n_in = cin * h * w
    basis = jnp.eye(n_in, dtype=jnp.float32).reshape(n_in, cin, h, w)
    y = jax.lax.conv_general_dilated(
        basis, w_oihw.astype(jnp.float32),
        window_strides=(stride, stride),
        padding=((pad, pad), (pad, pad)),
        dimension_numbers=("NCHW", "OIHW", "NCHW"))
    oh, ow = y.shape[2], y.shape[3]
    return y.reshape(n_in, cout * oh * ow), (oh, ow)


def build_kernel_params(p, hw=16):
    t1, (oh1, ow1) = _conv_to_toeplitz(p["conv1_w"], (hw, hw), stride=2, pad=1)
    t2, (oh2, ow2) = _conv_to_toeplitz(p["conv2_w"], (oh1, ow1), stride=2, pad=1)
    b1 = jnp.repeat(p["conv1_b"], oh1 * ow1).reshape(1, -1)   # NCHW-flat bias
    b2 = jnp.repeat(p["conv2_b"], oh2 * ow2).reshape(1, -1)
    w_heads = jnp.concatenate(
        [p["fc_mu_w"], p["fc_kappa_w"], p["fc_c_mu_w"],
         p["fc_c_logvar_w"], p["fc_gripper_w"]], axis=1)       # (256, 11)
    b_heads = jnp.concatenate(
        [p["fc_mu_b"], p["fc_kappa_b"], p["fc_c_mu_b"],
         p["fc_c_logvar_b"], p["fc_gripper_b"]]).reshape(1, -1)
    # Zero-pad heads to 128 lanes: unmasked MXU result tile + full-lane store.
    w_heads = jnp.pad(w_heads, ((0, 0), (0, HEAD_PAD - HEAD_DIM)))
    b_heads = jnp.pad(b_heads, ((0, 0), (0, HEAD_PAD - HEAD_DIM)))
    return {
        "t1": t1.astype(jnp.bfloat16), "b1": b1.astype(jnp.float32),
        "t2": t2.astype(jnp.bfloat16), "b2": b2.astype(jnp.float32),
        "w_heads": w_heads.astype(jnp.bfloat16),
        "b_heads": b_heads.astype(jnp.float32),
    }


# ---------------------------------------------------------------------------
# Pure-JAX reference (exact PyTorch semantics) for correctness checking.
# ---------------------------------------------------------------------------
def vmf_encoder_reference(p, x_nchw):
    def conv(x, w, b, s):
        y = jax.lax.conv_general_dilated(
            x, w, (s, s), ((1, 1), (1, 1)),
            dimension_numbers=("NCHW", "OIHW", "NCHW"))
        return y + b[None, :, None, None]

    h = jnp.maximum(conv(x_nchw, p["conv1_w"], p["conv1_b"], 2), 0.0)
    h = jnp.maximum(conv(h, p["conv2_w"], p["conv2_b"], 2), 0.0)
    h = h.reshape(h.shape[0], -1)                        # nn.Flatten (NCHW order)
    mu_raw = h @ p["fc_mu_w"] + p["fc_mu_b"]
    mu = mu_raw / jnp.maximum(jnp.linalg.norm(mu_raw, axis=-1, keepdims=True), 1e-12)
    kappa = jax.nn.softplus(h @ p["fc_kappa_w"] + p["fc_kappa_b"]) + 1.0
    c_mu = h @ p["fc_c_mu_w"] + p["fc_c_mu_b"]
    c_logvar = h @ p["fc_c_logvar_w"] + p["fc_c_logvar_b"]
    grip = h @ p["fc_gripper_w"] + p["fc_gripper_b"]
    return mu, kappa, c_mu, c_logvar, grip


if __name__ == "__main__":
    key = jax.random.PRNGKey(0)
    k_param, k_x = jax.random.split(key)
    torch_params = init_torch_like_params(k_param)
    kernel_params = build_kernel_params(torch_params)
    x = jax.random.normal(k_x, (2, 4, 16, 16), jnp.float32)   # NCHW, like PyTorch

    fwd = jax.jit(vmf_encoder_forward)
    out = jax.block_until_ready(fwd(kernel_params, x))
    mu, kappa, c_mu, c_logvar, grip = out
    assert mu.shape == (2, 3) and kappa.shape == (2, 1)
    assert c_mu.shape == (2, 3) and c_logvar.shape == (2, 3) and grip.shape == (2, 1)

    ref = vmf_encoder_reference(torch_params, x)
    for got, want in zip(out, ref):
        assert jnp.allclose(got, want, atol=5e-2, rtol=5e-2), (got, want)
    # vMF parameterization invariants: unit-norm mu, kappa > 1.
    assert jnp.allclose(jnp.linalg.norm(mu, axis=-1), 1.0, atol=1e-3)
    assert bool(jnp.all(kappa > 1.0))
    print("KERNEL_OK")
</pallas_src>

<mosaic_0001>
module attributes {stable_mosaic.version = 11 : i64} {
  func.func @_vmf_encoder_kernel(%arg0: i32, %arg1: i32, %arg2: memref<2x256xf32, #tpu.memory_space<vmem>>, %arg3: memref<256x512xbf16, #tpu.memory_space<vmem>>, %arg4: memref<1x512xf32, #tpu.memory_space<vmem>>, %arg5: memref<512x256xbf16, #tpu.memory_space<vmem>>, %arg6: memref<1x256xf32, #tpu.memory_space<vmem>>, %arg7: memref<256x128xbf16, #tpu.memory_space<vmem>>, %arg8: memref<1x128xf32, #tpu.memory_space<vmem>>, %arg9: memref<2x128xf32, #tpu.memory_space<vmem>>, %arg10: memref<2x512xf32, #tpu.memory_space<vmem>>) attributes {dimension_semantics = [#tpu.dimension_semantics<parallel>, #tpu.dimension_semantics<arbitrary>], iteration_bounds = array<i64: 1, 4>, scalar_prefetch = 0 : i64, scratch_operands = 1 : i64, tpu.core_type = #tpu.core_type<tc>, window_params = [{transform_indices = @transform_0, window_bounds = array<i64: 2, 256>}, {transform_indices = @transform_1, window_bounds = array<i64: 256, 512>}, {pipeline_mode = #tpu.pipeline_mode<synchronous>, transform_indices = @transform_2, window_bounds = array<i64: 1, 512>}, {pipeline_mode = #tpu.pipeline_mode<synchronous>, transform_indices = @transform_3, window_bounds = array<i64: 512, 256>}, {pipeline_mode = #tpu.pipeline_mode<synchronous>, transform_indices = @transform_4, window_bounds = array<i64: 1, 256>}, {pipeline_mode = #tpu.pipeline_mode<synchronous>, transform_indices = @transform_5, window_bounds = array<i64: 256, 128>}, {pipeline_mode = #tpu.pipeline_mode<synchronous>, transform_indices = @transform_6, window_bounds = array<i64: 1, 128>}, {transform_indices = @transform_7, window_bounds = array<i64: 2, 128>}]} {
    %c0_i32 = arith.constant 0 : i32
    %0 = arith.cmpi eq, %arg1, %c0_i32 : i32
    %1 = arith.extui %0 : i1 to i32
    %c0_i32_0 = arith.constant 0 : i32
    %2 = arith.cmpi ne, %1, %c0_i32_0 : i32
    scf.if %2 {
      %cst_9 = arith.constant 0.000000e+00 : f32
      %13 = vector.broadcast %cst_9 : f32 to vector<2x512xf32>
      %c0_10 = arith.constant 0 : index
      %c0_11 = arith.constant 0 : index
      %14 = vector.load %arg10[%c0_10, %c0_11] : memref<2x512xf32, #tpu.memory_space<vmem>>, vector<2x512xf32>
      tpu.vector_store %arg10[%c0_10, %c0_11], %13 {strides = array<i32>} : memref<2x512xf32, #tpu.memory_space<vmem>>, vector<2x512xf32>,
    } else {
    }
    %c0 = arith.constant 0 : index
    %c0_1 = arith.constant 0 : index
    %3 = vector.load %arg10[%c0, %c0_1] : memref<2x512xf32, #tpu.memory_space<vmem>>, vector<2x512xf32>
    %c0_2 = arith.constant 0 : index
    %c0_3 = arith.constant 0 : index
    %4 = vector.load %arg2[%c0_2, %c0_3] : memref<2x256xf32, #tpu.memory_space<vmem>>, vector<2x256xf32>
    %5 = arith.truncf %4 : vector<2x256xf32> to vector<2x256xbf16>
    %c0_4 = arith.constant 0 : index
    %c0_5 = arith.constant 0 : index
    %6 = vector.load %arg3[%c0_4, %c0_5] : memref<256x512xbf16, #tpu.memory_space<vmem>>, vector<256x512xbf16>
    %cst = arith.constant dense<0.000000e+00> : vector<2x512xf32>
    %7 = tpu.matmul %5, %6, %cst {dimension_numbers = #tpu.dot_dimension_numbers<[1], [0], [0], [1], [0, 0, 1, 1], [], []>} : vector<2x256xbf16>, vector<256x512xbf16>, vector<2x512xf32> -> vector<2x512xf32>
    %8 = arith.addf %3, %7 : vector<2x512xf32>
    %c0_6 = arith.constant 0 : index
    %c0_7 = arith.constant 0 : index
    %9 = vector.load %arg10[%c0_6, %c0_7] : memref<2x512xf32, #tpu.memory_space<vmem>>, vector<2x512xf32>
    tpu.vector_store %arg10[%c0_6, %c0_7], %8 {strides = array<i32>} : memref<2x512xf32, #tpu.memory_space<vmem>>, vector<2x512xf32>,
    %c3_i32 = arith.constant 3 : i32
    %10 = arith.cmpi eq, %arg1, %c3_i32 : i32
    %11 = arith.extui %10 : i1 to i32
    %c0_i32_8 = arith.constant 0 : i32
    %12 = arith.cmpi ne, %11, %c0_i32_8 : i32
    scf.if %12 {
      %c0_9 = arith.constant 0 : index
      %c0_10 = arith.constant 0 : index
      %13 = vector.load %arg10[%c0_9, %c0_10] : memref<2x512xf32, #tpu.memory_space<vmem>>, vector<2x512xf32>
      %c0_11 = arith.constant 0 : index
      %c0_12 = arith.constant 0 : index
      %14 = vector.load %arg4[%c0_11, %c0_12] : memref<1x512xf32, #tpu.memory_space<vmem>>, vector<1x512xf32>
      %15 = vector.broadcast %14 : vector<1x512xf32> to vector<2x512xf32>
      %16 = arith.addf %13, %15 : vector<2x512xf32>
      %cst_13 = arith.constant 0.000000e+00 : f32
      %17 = vector.broadcast %cst_13 : f32 to vector<2x512xf32>
      %18 = arith.maximumf %16, %17 : vector<2x512xf32>
      %19 = arith.truncf %18 : vector<2x512xf32> to vector<2x512xbf16>
      %c0_14 = arith.constant 0 : index
      %c0_15 = arith.constant 0 : index
      %20 = vector.load %arg5[%c0_14, %c0_15] : memref<512x256xbf16, #tpu.memory_space<vmem>>, vector<512x256xbf16>
      %cst_16 = arith.constant dense<0.000000e+00> : vector<2x256xf32>
      %21 = tpu.matmul %19, %20, %cst_16 {dimension_numbers = #tpu.dot_dimension_numbers<[1], [0], [0], [1], [0, 0, 1, 1], [], []>} : vector<2x512xbf16>, vector<512x256xbf16>, vector<2x256xf32> -> vector<2x256xf32>
      %c0_17 = arith.constant 0 : index
      %c0_18 = arith.constant 0 : index
      %22 = vector.load %arg6[%c0_17, %c0_18] : memref<1x256xf32, #tpu.memory_space<vmem>>, vector<1x256xf32>
      %23 = vector.broadcast %22 : vector<1x256xf32> to vector<2x256xf32>
      %24 = arith.addf %21, %23 : vector<2x256xf32>
      %cst_19 = arith.constant 0.000000e+00 : f32
      %25 = vector.broadcast %cst_19 : f32 to vector<2x256xf32>
      %26 = arith.maximumf %24, %25 : vector<2x256xf32>
      %27 = arith.truncf %26 : vector<2x256xf32> to vector<2x256xbf16>
      %c0_20 = arith.constant 0 : index
      %c0_21 = arith.constant 0 : index
      %28 = vector.load %arg7[%c0_20, %c0_21] : memref<256x128xbf16, #tpu.memory_space<vmem>>, vector<256x128xbf16>
      %cst_22 = arith.constant dense<0.000000e+00> : vector<2x128xf32>
      %29 = tpu.matmul %27, %28, %cst_22 {dimension_numbers = #tpu.dot_dimension_numbers<[1], [0], [0], [1], [0, 0, 1, 1], [], []>} : vector<2x256xbf16>, vector<256x128xbf16>, vector<2x128xf32> -> vector<2x128xf32>
      %c0_23 = arith.constant 0 : index
      %c0_24 = arith.constant 0 : index
      %30 = vector.load %arg8[%c0_23, %c0_24] : memref<1x128xf32, #tpu.memory_space<vmem>>, vector<1x128xf32>
      %31 = vector.broadcast %30 : vector<1x128xf32> to vector<2x128xf32>
      %32 = arith.addf %29, %31 : vector<2x128xf32>
      %33 = tpu.iota {dimensions = array<i32: 1>} : vector<2x128xi32>
      %c3_i32_25 = arith.constant 3 : i32
      %34 = vector.broadcast %c3_i32_25 : i32 to vector<2x128xi32>
      %35 = arith.cmpi slt, %33, %34 : vector<2x128xi32>
      %c3_i32_26 = arith.constant 3 : i32
      %36 = vector.broadcast %c3_i32_26 : i32 to vector<2x128xi32>
      %37 = arith.cmpi eq, %33, %36 : vector<2x128xi32>
      %38 = arith.mulf %32, %32 : vector<2x128xf32>
      %cst_27 = arith.constant 0.000000e+00 : f32
      %39 = vector.broadcast %cst_27 : f32 to vector<2x128xf32>
      %40 = arith.select %35, %38, %39 : vector<2x128xi1>, vector<2x128xf32>
      %cst_28 = arith.constant dense<0.000000e+00> : vector<2xf32>
      %41 = vector.multi_reduction <add>, %40, %cst_28 [1] : vector<2x128xf32> to vector<2xf32>
      %42 = vector.shape_cast %41 : vector<2xf32> to vector<2x1xf32>
      %43 = math.sqrt %42 : vector<2x1xf32>
      %cst_29 = arith.constant 9.99999996E-13 : f32
      %44 = vector.broadcast %cst_29 : f32 to vector<2x1xf32>
      %45 = arith.maximumf %43, %44 : vector<2x1xf32>
      %46 = vector.broadcast %45 : vector<2x1xf32> to vector<2x128xf32>
      %47 = arith.divf %32, %46 : vector<2x128xf32>
      %cst_30 = arith.constant 0.000000e+00 : f32
      %48 = vector.broadcast %cst_30 : f32 to vector<2x128xf32>
      %49 = arith.maximumf %32, %48 : vector<2x128xf32>
      %50 = math.absf %32 : vector<2x128xf32>
      %cst_31 = arith.constant 0.000000e+00 : f32
      %51 = vector.broadcast %cst_31 : f32 to vector<2x128xf32>
      %52 = arith.subf %51, %50 : vector<2x128xf32>
      %53 = math.exp %52 : vector<2x128xf32>
      %cst_32 = arith.constant 1.000000e+00 : f32
      %54 = vector.broadcast %cst_32 : f32 to vector<2x128xf32>
      %55 = arith.addf %54, %53 : vector<2x128xf32>
      %56 = math.log %55 : vector<2x128xf32>
      %57 = arith.addf %49, %56 : vector<2x128xf32>
      %cst_33 = arith.constant 1.000000e+00 : f32
      %58 = vector.broadcast %cst_33 : f32 to vector<2x128xf32>
      %59 = arith.addf %57, %58 : vector<2x128xf32>
      %60 = arith.select %37, %59, %32 : vector<2x128xi1>, vector<2x128xf32>
      %61 = arith.select %35, %47, %60 : vector<2x128xi1>, vector<2x128xf32>
      %c0_34 = arith.constant 0 : index
      %c0_35 = arith.constant 0 : index
      %62 = vector.load %arg9[%c0_34, %c0_35] : memref<2x128xf32, #tpu.memory_space<vmem>>, vector<2x128xf32>
      tpu.vector_store %arg9[%c0_34, %c0_35], %61 {strides = array<i32>} : memref<2x128xf32, #tpu.memory_space<vmem>>, vector<2x128xf32>,
    } else {
    }
    return
  }
  func.func @transform_0(%arg0: i32, %arg1: i32) -> (i32, i32) {
    %c0_i32 = arith.constant 0 : i32
    return %arg0, %arg1 : i32, i32
  }
  func.func @transform_1(%arg0: i32, %arg1: i32) -> (i32, i32) {
    %c0_i32 = arith.constant 0 : i32
    %c0_i32_0 = arith.constant 0 : i32
    return %arg1, %c0_i32 : i32, i32
  }
  func.func @transform_2(%arg0: i32, %arg1: i32) -> (i32, i32) {
    %c0_i32 = arith.constant 0 : i32
    %c0_i32_0 = arith.constant 0 : i32
    %c0_i32_1 = arith.constant 0 : i32
    return %c0_i32, %c0_i32_0 : i32, i32
  }
  func.func @transform_3(%arg0: i32, %arg1: i32) -> (i32, i32) {
    %c0_i32 = arith.constant 0 : i32
    %c0_i32_0 = arith.constant 0 : i32
    %c0_i32_1 = arith.constant 0 : i32
    return %c0_i32, %c0_i32_0 : i32, i32
  }
  func.func @transform_4(%arg0: i32, %arg1: i32) -> (i32, i32) {
    %c0_i32 = arith.constant 0 : i32
    %c0_i32_0 = arith.constant 0 : i32
    %c0_i32_1 = arith.constant 0 : i32
    return %c0_i32, %c0_i32_0 : i32, i32
  }
  func.func @transform_5(%arg0: i32, %arg1: i32) -> (i32, i32) {
    %c0_i32 = arith.constant 0 : i32
    %c0_i32_0 = arith.constant 0 : i32
    %c0_i32_1 = arith.constant 0 : i32
    return %c0_i32, %c0_i32_0 : i32, i32
  }
  func.func @transform_6(%arg0: i32, %arg1: i32) -> (i32, i32) {
    %c0_i32 = arith.constant 0 : i32
    %c0_i32_0 = arith.constant 0 : i32
    %c0_i32_1 = arith.constant 0 : i32
    return %c0_i32, %c0_i32_0 : i32, i32
  }
  func.func @transform_7(%arg0: i32, %arg1: i32) -> (i32, i32) {
    %c0_i32 = arith.constant 0 : i32
    %c0_i32_0 = arith.constant 0 : i32
    return %arg0, %c0_i32 : i32, i32
  }
}

</mosaic_0001>

<bundles_post_ra>
// kernel: vmf_encoder_forward.1
= control target key start
LH: loop header
LB: loop body
LE: loop exit
PB: predicated region body
PF: predicated region fallthrough
CT: control target
= control target key end

     0   :  { %s3045_s0 = inlined_call_operand.vmem [shape: f32[2,1024], index: 0, kind: input, shape index: {}]   ;;  %s3046_s1 = inlined_call_operand.hbm [shape: bf16[1024,512], index: 1, kind: input, shape index: {}]   ;;  %s3047_s2 = inlined_call_operand.vmem [shape: f32[1,512], index: 2, kind: input, shape index: {}]   ;;  %s3048_s3 = inlined_call_operand.hbm [shape: bf16[512,256], index: 3, kind: input, shape index: {}]   ;;  %s3049_s4 = inlined_call_operand.vmem [shape: f32[1,256], index: 4, kind: input, shape index: {}]   ;;  %s3050_s5 = inlined_call_operand.vmem [shape: bf16[256,128], index: 5, kind: input, shape index: {}]   ;;  %s3051_s6 = inlined_call_operand.vmem [shape: f32[1,128], index: 6, kind: input, shape index: {}]   ;;  %s3052_s7 = inlined_call_operand.vmem [shape: f32[2,128], index: 7, kind: output, shape index: {}]  }
   0x1   :  { %3054 = sst [smem:[#allocation10_spill]] %s3048_s3 }
   0x2   :  { %12 = vsyncpa [#allocation4], 0 }
   0x3   :  { %14 = vsyncpa [#allocation4 + $0x1], 0 }
   0x4   :  { %15 = vsyncpa [#allocation6], 0  ;;  %s2705_s24 = smov 0   ;;  %s2707_s25 = smov 0  }
   0x5   :  { %s2709_s26 = smov 0   ;;  %s2711_s27 = smov 0  }
   0x6   :  { %s2713_s28 = smov 0   ;;  %s2715_s29 = smov 0  }
   0x7 LB: > { %s1723_s30 = sadd.s32 4294967295, %s2657_s29   ;;  %p81_p0 = scmp.ne.s32.totalorder %s2641_s25, %s2637_s24  ;;  %s2657_s29 = sphi %s2715_s29, %s21_s29   ;;  %s2653_s28 = sphi %s2713_s28, %s3066_s28   ;;  %s2649_s27 = sphi %s2711_s27, %s3065_s27   ;;  %s2645_s26 = sphi %s2709_s26, %s3064_s26   ;;  %s2641_s25 = sphi %s2707_s25, %s3063_s25   ;;  %s2637_s24 = sphi %s2705_s24, %s3062_s24  }
   0x8   : > { %p2735_p1 = scmp.eq.s32.totalorder %s1723_s30, 0  ;;  %p1724_p2 = scmp.ge.s32.totalorder %s2657_s29, 1 }
   0x9   : > { %p223_p3 = scmp.lt.s32.totalorder %s2657_s29, 5  ;;  %s3057_s3 = sld [smem:[#allocation10_spill]] }
   0xa   : > { %p2743_p4 = por %p2735_p1, %p81_p0  ;;  %s2659_s14 = smov [#allocation5]  }
   0xb   : > { %p2750_p5 = pnand %p1724_p2, %p223_p3  ;;  %s239_s15 = sshll.u32 %s2659_s14, 4  ;;  %s240_s15 = int_to_ptr.vmem [resolvable:$true] %s239_s15 }
   0xc   : > { %s2660_s16 = smov 128   ;;  %s2661_s17 = smov 8  }
   0xd   : > { %p2469_p6 = pneg %p2750_p5  ;;  %s30_s18 = sadd.s32 1, %s2653_s28 }
   0xe   : > { %p31_p8 = scmp.ge.s32.totalorder %s30_s18, 4  ;;  %s68_s19 = sadd.s32 1, %s2645_s26 }
   0xf   : > { %s237_s12 = sshll.u32 %s3057_s3, 4  ;;  %p2470_p7 = pnand %p2469_p6, %p2735_p1  ;;  %s238_s12 = int_to_ptr.hbm [resolvable:$true] %s237_s12 }
  0x10   : > { %p75_p9 = scmp.ne.s32.totalorder %s2645_s26, %s2641_s25  ;;  %p76_p10 = scmp.eq.s32.totalorder %s2657_s29, 0 }
  0x11   : > { %2472 = dma.hbm_to_vmem [thread:$0]  (!%p2470_p7), %s238_s12, 8192, %s240_s15, [#allocation6], %s2660_s16, %s2660_s16, %s2661_s17  }
  0x12   : > { %s3068_s18 = smov (%p31_p8, %s30_s18), 0  ;;  %p2765_p11 = por %p76_p10, %p75_p9 }
  0x13   : > { %3059 = sst [smem:[#allocation9_spill]] %s3068_s18  ;;  %p2478_p12 = scmp.lt.s32.totalorder %s2657_s29, 4 }
  0x14   : > { %s65_s21 = ssub.s32 %s2653_s28, %s3068_s18  ;;  %s275_s22 = sand.u32 1, %s2645_s26  }
  0x15   : > { %p66_p13 = scmp.eq.s32.totalorder %s65_s21, 0  ;;  %s1727_s23 = sshll.u32 %s275_s22, 9 }
  0x16   : > { %s2318_s24 = sshll.u32 %s2653_s28, 9  ;;  %s279_s15 = scalar_lea.vmem [#allocation3], %s1727_s23 }
  0x17   : > { %s2775_s30 = scalar_select %p66_p13, %s2645_s26, %s68_s19  }
  0x18   : > { %s285_s12 = scalar_lea.hbm %s3046_s1, %s2318_s24  ;;  %s288_s16 = sshll.u32 %s279_s15, 4  ;;  %s289_s16 = int_to_ptr.vmem [resolvable:$true] %s288_s16 }
  0x19   : > { %s286_s14 = sshll.u32 %s285_s12, 4  ;;  %p2474_p0 = pnand %p2478_p12, %p2765_p11  ;;  %s287_s14 = int_to_ptr.hbm [resolvable:$true] %s286_s14 }
  0x1a   : > { %s276_s17 = scalar_lea.sflag [#allocation4], %s275_s22  ;;  %s2662_s3 = smov 256  }
  0x1b   : > { %s2663_s18 = smov 16   ;;  %300 = sbr.rel (%p2750_p5) target bundleno = 753 (0x2f1), region = 48 }
  0x1c   : > { %2476 = dma.hbm_to_vmem [thread:$0]  (!%p2474_p0), %s287_s14, 8192, %s289_s16, %s276_s17, %s2662_s3, %s2662_s3, %s2663_s18  }
  0x1d   : > { %s302_s19 = sand.u32 (!%p2750_p5), 1, %s2641_s25  }
  0x1e   : > { %s1732_s21 = sshll.u32 (!%p2750_p5), %s302_s19, 9  ;;  %s303_s24 = scalar_lea.sflag (!%p2750_p5), [#allocation4], %s302_s19 }
  0x1f   : > { %s2787_s10 = scalar_lea.vmem (!%p2750_p5), [#allocation3], %s1732_s21 }
  0x20   : > { %2628 = dma.done.wait (%p2743_p4), %s303_s24, 8192  }
  0x21   : > { %2630 = vsyncadd (%p2743_p4), %s303_s24, 4294959104 }
  0x22   : > { %2632 = dma.done.wait (%p2735_p1), [#allocation6], 8192  }
  0x23   : > { %2634 = vsyncadd (%p2735_p1), [#allocation6], 4294959104  ;;  %s1734_s3 = sshll.u32 %s2649_s27, 1  ;;  %p1736_p3 = scmp.ne.s32.totalorder %s2649_s27, 0 }
  0x24   : > { %p354_p2 = scmp.lt.s32.totalorder %s1734_s3, 7 }
  0x25   : > { %369 = sbr.rel (%p1736_p3) target bundleno = 44 (0x2c), region = 60 }
  0x26   : > { %s3070_s3 = smov (!%p354_p2, %s1734_s3), 7 }
  0x27   : > { %s1735_s13 = sshll.u32 %s3070_s3, 1 }
  0x28   : > { %s2801_s22 = scalar_lea.vmem %s3045_s0, %s1735_s13 }
  0x2a   : > { %v2664_v0 = vmov 0.0  }
  0x2b   : > { %370 = vst [vmem:[#allocation2] sm:$0xff] %v2664_v0 }
  0x2c PF: > { %v1851_v1 = vld [vmem:[%s2787_s10 + $0xe0] sm:$0xf]  ;;  %v2349_v2 = vld [vmem:[%s2787_s10 + $0xec] sm:$0xf0]  ;;  %v2347_v6 = vld [vmem:[%s2787_s10 + $0xe4] sm:$0xf] }
  0x2d   : > { %v1979_v3 = vld [vmem:[%s2787_s10 + $0x1e0] sm:$0xf]  ;;  %v1852_v4 = vor.u32 %v2349_v2, %v1851_v1  ;;  %v2381_v5 = vld [vmem:[%s2787_s10 + $0x1ec] sm:$0xf0]  ;;  %v1853_v7 = vld [vmem:[%s2787_s10 + $0xf0] sm:$0xf0] }
  0x2e   : > { %v1980_v8 = vor.u32 %v2381_v5, %v1979_v3  ;;  %v1856_v9 = vor.u32 %v2347_v6, %v1853_v7  ;;  %v2379_v10 = vld [vmem:[%s2787_s10 + $0x1e4] sm:$0xf]  ;;  %v1981_v11 = vld [vmem:[%s2787_s10 + $0x1f0] sm:$0xf0]  ;;  %v1835_v12 = vld [vmem:[%s2787_s10 + $0xc0] sm:$0xf] }
  0x2f   : > { %765 = vmatpush.bf16.msra.mxu0 %v1852_v4  ;;  %v1984_v13 = vor.u32 %v2379_v10, %v1981_v11  ;;  %v2345_v14 = vld [vmem:[%s2787_s10 + $0xcc] sm:$0xf0]  ;;  %v1963_v15 = vld [vmem:[%s2787_s10 + $0x1c0] sm:$0xf]  ;;  %v2343_v19 = vld [vmem:[%s2787_s10 + $0xc4] sm:$0xf] }
  0x30   : > { %v2377_v16 = vld [vmem:[%s2787_s10 + $0x1cc] sm:$0xf0]  ;;  %778 = vmatpush.bf16.msra.mxu1 %v1980_v8  ;;  %791 = vmatpush.bf16.msra.mxu2 %v1856_v9  ;;  %v1836_v17 = vor.u32 %v2345_v14, %v1835_v12  ;;  %v1837_v20 = vld [vmem:[%s2787_s10 + $0xd0] sm:$0xf0]  ;;  %v2375_v21 = vld [vmem:[%s2787_s10 + $0x1c4] sm:$0xf] }
  0x31   : > { %v1964_v18 = vor.u32 %v2377_v16, %v1963_v15  ;;  %804 = vmatpush.bf16.msra.mxu3 %v1984_v13  ;;  %v1840_v22 = vor.u32 %v2343_v19, %v1837_v20  ;;  %v1965_v23 = vld [vmem:[%s2787_s10 + $0x1d0] sm:$0xf0]  ;;  %v1819_v24 = vld [vmem:[%s2787_s10 + $0xa0] sm:$0xf]  ;;  %v2341_v25 = vld [vmem:[%s2787_s10 + $0xac] sm:$0xf0] }
  0x32   : > { %v1968_v26 = vor.u32 %v2375_v21, %v1965_v23  ;;  %v1947_v27 = vld [vmem:[%s2787_s10 + $0x1a0] sm:$0xf]  ;;  %v2373_v28 = vld [vmem:[%s2787_s10 + $0x1ac] sm:$0xf0]  ;;  %v2339_v29 = vld [vmem:[%s2787_s10 + $0xa4] sm:$0xf]  ;;  %v1820_v30 = vor.u32 %v2341_v25, %v1819_v24 }
  0x33   : > { %766 = vmatpush.bf16.msra.mxu0 %v1836_v17  ;;  %v1821_v31 = vld [vmem:[%s2787_s10 + $0xb0] sm:$0xf0]  ;;  %v2371_v32 = vld [vmem:[%s2787_s10 + $0x1a4] sm:$0xf]  ;;  %v1948_v34 = vor.u32 %v2373_v28, %v1947_v27  ;;  %v1803_v36 = vld [vmem:[%s2787_s10 + $0x80] sm:$0xf] }
  0x34   : > { %v1949_v33 = vld [vmem:[%s2787_s10 + $0x1b0] sm:$0xf0]  ;;  %779 = vmatpush.bf16.msra.mxu1 %v1964_v18  ;;  %792 = vmatpush.bf16.msra.mxu2 %v1840_v22  ;;  %v1824_v35 = vor.u32 %v2339_v29, %v1821_v31  ;;  %v2337_v37 = vld [vmem:[%s2787_s10 + $0x8c] sm:$0xf0]  ;;  %v1931_v38 = vld [vmem:[%s2787_s10 + $0x180] sm:$0xf] }
  0x35   : > { %805 = vmatpush.bf16.msra.mxu3 %v1968_v26  ;;  %v1952_v39 = vor.u32 %v2371_v32, %v1949_v33  ;;  %v2369_v40 = vld [vmem:[%s2787_s10 + $0x18c] sm:$0xf0]  ;;  %v2335_v41 = vld [vmem:[%s2787_s10 + $0x84] sm:$0xf]  ;;  %v1805_v42 = vld [vmem:[%s2787_s10 + $0x90] sm:$0xf0]  ;;  %v1804_v45 = vor.u32 %v2337_v37, %v1803_v36 }
  0x36   : > { %v2367_v43 = vld [vmem:[%s2787_s10 + $0x184] sm:$0xf]  ;;  %v1933_v44 = vld [vmem:[%s2787_s10 + $0x190] sm:$0xf0]  ;;  %v1932_v46 = vor.u32 %v2369_v40, %v1931_v38  ;;  %v1808_v47 = vor.u32 %v2335_v41, %v1805_v42  ;;  %v1787_v48 = vld [vmem:[%s2787_s10 + $0x60] sm:$0xf] }
  0x37   : > { %767 = vmatpush.bf16.msra.mxu0 %v1820_v30  ;;  %v2333_v49 = vld [vmem:[%s2787_s10 + $0x6c] sm:$0xf0]  ;;  %v1915_v50 = vld [vmem:[%s2787_s10 + $0x160] sm:$0xf]  ;;  %v1936_v51 = vor.u32 %v2367_v43, %v1933_v44  ;;  %v2331_v53 = vld [vmem:[%s2787_s10 + $0x64] sm:$0xf] }
  0x38   : > { %780 = vmatpush.bf16.msra.mxu1 %v1948_v34  ;;  %793 = vmatpush.bf16.msra.mxu2 %v1824_v35  ;;  %v2365_v52 = vld [vmem:[%s2787_s10 + $0x16c] sm:$0xf0]  ;;  %v1789_v54 = vld [vmem:[%s2787_s10 + $0x70] sm:$0xf0]  ;;  %v2363_v55 = vld [vmem:[%s2787_s10 + $0x164] sm:$0xf]  ;;  %v1788_v57 = vor.u32 %v2333_v49, %v1787_v48 }
  0x39   : > { %806 = vmatpush.bf16.msra.mxu3 %v1952_v39  ;;  %v1917_v56 = vld [vmem:[%s2787_s10 + $0x170] sm:$0xf0]  ;;  %v1916_v58 = vor.u32 %v2365_v52, %v1915_v50  ;;  %v1792_v59 = vor.u32 %v2331_v53, %v1789_v54  ;;  %v1771_v60 = vld [vmem:[%s2787_s10 + $0x40] sm:$0xf]  ;;  %v2329_v61 = vld [vmem:[%s2787_s10 + $0x4c] sm:$0xf0] }
  0x3a   : > { %v1899_v62 = vld [vmem:[%s2787_s10 + $0x140] sm:$0xf]  ;;  %v1920_v63 = vor.u32 %v2363_v55, %v1917_v56  ;;  %v2361_v0 = vld [vmem:[%s2787_s10 + $0x14c] sm:$0xf0]  ;;  %v2327_v1 = vld [vmem:[%s2787_s10 + $0x44] sm:$0xf]  ;;  %v1772_v5 = vor.u32 %v2329_v61, %v1771_v60 }
  0x3b   : > { %768 = vmatpush.bf16.msra.mxu0 %v1804_v45  ;;  %v1773_v2 = vld [vmem:[%s2787_s10 + $0x50] sm:$0xf0]  ;;  %v2359_v3 = vld [vmem:[%s2787_s10 + $0x144] sm:$0xf]  ;;  %v1900_v6 = vor.u32 %v2361_v0, %v1899_v62  ;;  %v1755_v8 = vld [vmem:[%s2787_s10 + $0x20] sm:$0xf] }
  0x3c   : > { %781 = vmatpush.bf16.msra.mxu1 %v1932_v46  ;;  %794 = vmatpush.bf16.msra.mxu2 %v1808_v47  ;;  %v1901_v4 = vld [vmem:[%s2787_s10 + $0x150] sm:$0xf0]  ;;  %v1776_v7 = vor.u32 %v2327_v1, %v1773_v2  ;;  %v2325_v9 = vld [vmem:[%s2787_s10 + $0x2c] sm:$0xf0]  ;;  %v1883_v10 = vld [vmem:[%s2787_s10 + $0x120] sm:$0xf] }
  0x3d   : > { %807 = vmatpush.bf16.msra.mxu3 %v1936_v51  ;;  %v1904_v11 = vor.u32 %v2359_v3, %v1901_v4  ;;  %v2357_v12 = vld [vmem:[%s2787_s10 + $0x12c] sm:$0xf0]  ;;  %v2323_v13 = vld [vmem:[%s2787_s10 + $0x24] sm:$0xf]  ;;  %v1757_v14 = vld [vmem:[%s2787_s10 + $0x30] sm:$0xf0]  ;;  %v1756_v18 = vor.u32 %v2325_v9, %v1755_v8 }
  0x3e   : > { %v2355_v15 = vld [vmem:[%s2787_s10 + $0x124] sm:$0xf]  ;;  %v1885_v16 = vld [vmem:[%s2787_s10 + $0x130] sm:$0xf0]  ;;  %v1739_v17 = vld [vmem:[%s2787_s10] sm:$0xf]  ;;  %v1884_v22 = vor.u32 %v2357_v12, %v1883_v10  ;;  %v1760_v23 = vor.u32 %v2323_v13, %v1757_v14 }
  0x3f   : > { %769 = vmatpush.bf16.msra.mxu0 %v1788_v57  ;;  %v2321_v19 = vld [vmem:[%s2787_s10 + $0xc] sm:$0xf0]  ;;  %v1867_v20 = vld [vmem:[%s2787_s10 + $0x100] sm:$0xf]  ;;  %v2319_v24 = vld [vmem:[%s2787_s10 + $0x4] sm:$0xf]  ;;  %v1888_v27 = vor.u32 %v2355_v15, %v1885_v16 }
  0x40   : > { %782 = vmatpush.bf16.msra.mxu1 %v1916_v58  ;;  %795 = vmatpush.bf16.msra.mxu2 %v1792_v59  ;;  %v2353_v21 = vld [vmem:[%s2787_s10 + $0x10c] sm:$0xf0]  ;;  %v1741_v25 = vld [vmem:[%s2787_s10 + $0x10] sm:$0xf0]  ;;  %v2351_v26 = vld [vmem:[%s2787_s10 + $0x104] sm:$0xf]  ;;  %v1740_v34 = vor.u32 %v2321_v19, %v1739_v17 }
  0x41   : > { %808 = vmatpush.bf16.msra.mxu3 %v1920_v63  ;;  %v1869_v28 = vld [vmem:[%s2787_s10 + $0x110] sm:$0xf0]  ;;  %v1859_v29 = vld [vmem:[%s2787_s10 + $0xe8] sm:$0xf]  ;;  %v2350_v30 = vld [vmem:[%s2787_s10 + $0xf4] sm:$0xf0]  ;;  %v1868_v37 = vor.u32 %v2353_v21, %v1867_v20  ;;  %v1744_v38 = vor.u32 %v2319_v24, %v1741_v25 }
  0x42   : > { %v1987_v31 = vld [vmem:[%s2787_s10 + $0x1e8] sm:$0xf]  ;;  %v2382_v32 = vld [vmem:[%s2787_s10 + $0x1f4] sm:$0xf0]  ;;  %v372_v33 = vld [vmem:[%s2801_s22] sm:$0xf]  ;;  %v1872_v41 = vor.u32 %v2351_v26, %v1869_v28  ;;  %v1860_v42 = vor.u32 %v2350_v30, %v1859_v29 }
  0x43   : > { %770 = vmatpush.bf16.msra.mxu0 %v1772_v5  ;;  %v2348_v35 = vld [vmem:[%s2787_s10 + $0xec] sm:$0xf]  ;;  %v1861_v36 = vld [vmem:[%s2787_s10 + $0xf8] sm:$0xf0]  ;;  %374 = vst [vmem:[#allocation1] ss:$4 sm:$0xff] %v372_v33  ;;  %v1988_v43 = vor.u32 %v2382_v32, %v1987_v31 }
  0x44   : > { %783 = vmatpush.bf16.msra.mxu1 %v1900_v6  ;;  %796 = vmatpush.bf16.msra.mxu2 %v1776_v7  ;;  %v2380_v39 = vld [vmem:[%s2787_s10 + $0x1ec] sm:$0xf]  ;;  %v1989_v40 = vld [vmem:[%s2787_s10 + $0x1f8] sm:$0xf0]  ;;  %v1864_v44 = vor.u32 %v2348_v35, %v1861_v36  ;;  %v1843_v45 = vld [vmem:[%s2787_s10 + $0xc8] sm:$0xf] }
  0x45   : > { %809 = vmatpush.bf16.msra.mxu3 %v1904_v11  ;;  %v2346_v46 = vld [vmem:[%s2787_s10 + $0xd4] sm:$0xf0]  ;;  %v1971_v47 = vld [vmem:[%s2787_s10 + $0x1c8] sm:$0xf]  ;;  %v1992_v48 = vor.u32 %v2380_v39, %v1989_v40  ;;  %v2344_v50 = vld [vmem:[%s2787_s10 + $0xcc] sm:$0xf] }
  0x46   : > { %v2378_v49 = vld [vmem:[%s2787_s10 + $0x1d4] sm:$0xf0]  ;;  %v1845_v51 = vld [vmem:[%s2787_s10 + $0xd8] sm:$0xf0]  ;;  %v2376_v52 = vld [vmem:[%s2787_s10 + $0x1cc] sm:$0xf]  ;;  %v1844_v54 = vor.u32 %v2346_v46, %v1843_v45 }
  0x47   : > { %771 = vmatpush.bf16.msra.mxu0 %v1756_v18  ;;  %v1973_v53 = vld [vmem:[%s2787_s10 + $0x1d8] sm:$0xf0]  ;;  %v1827_v55 = vld [vmem:[%s2787_s10 + $0xa8] sm:$0xf]  ;;  %v2342_v56 = vld [vmem:[%s2787_s10 + $0xb4] sm:$0xf0]  ;;  %v1972_v58 = vor.u32 %v2378_v49, %v1971_v47  ;;  %v1848_v59 = vor.u32 %v2344_v50, %v1845_v51 }
  0x48   : > { %784 = vmatpush.bf16.msra.mxu1 %v1884_v22  ;;  %797 = vmatpush.bf16.msra.mxu2 %v1760_v23  ;;  %v1955_v57 = vld [vmem:[%s2787_s10 + $0x1a8] sm:$0xf]  ;;  %v1976_v62 = vor.u32 %v2376_v52, %v1973_v53  ;;  %v2374_v0 = vld [vmem:[%s2787_s10 + $0x1b4] sm:$0xf0]  ;;  %v2340_v1 = vld [vmem:[%s2787_s10 + $0xac] sm:$0xf]  ;;  %v1828_v6 = vor.u32 %v2342_v56, %v1827_v55 }
  0x49   : > { %810 = vmatpush.bf16.msra.mxu3 %v1888_v27  ;;  %v1829_v2 = vld [vmem:[%s2787_s10 + $0xb8] sm:$0xf0]  ;;  %v2372_v4 = vld [vmem:[%s2787_s10 + $0x1ac] sm:$0xf]  ;;  %v1956_v7 = vor.u32 %v2374_v0, %v1955_v57  ;;  %v1811_v9 = vld [vmem:[%s2787_s10 + $0x88] sm:$0xf] }
  0x4a   : > { %v375_v60 = vld.sshfl [vmem:[#allocation1] sm:$0xff pattern:$0x73625140]  ;;  %v376_v61 = vld.sshfl [vmem:[#allocation1 + $0x8] sm:$0xff pattern:$0x73625140]  ;;  %v1832_v8 = vor.u32 %v2340_v1, %v1829_v2 }
  0x4b   : > { %772 = vmatpush.bf16.msra.mxu0 %v1740_v34  ;;  %v2888_v63 = vpack.c.bf16 %v375_v60, %v375_v60  ;;  %v2893_v3 = vpack.c.bf16 %v376_v61, %v376_v61  ;;  %v1957_v5 = vld [vmem:[%s2787_s10 + $0x1b8] sm:$0xf0]  ;;  %v2338_v10 = vld [vmem:[%s2787_s10 + $0x94] sm:$0xf0]  ;;  %v1939_v11 = vld [vmem:[%s2787_s10 + $0x188] sm:$0xf] }
  0x4c   : > { %785 = vmatpush.bf16.msra.mxu1 %v1868_v37  ;;  %798 = vmatpush.bf16.msra.mxu2 %v1744_v38  ;;  %v1960_v12 = vor.u32 %v2372_v4, %v1957_v5  ;;  %v2370_v13 = vld [vmem:[%s2787_s10 + $0x194] sm:$0xf0]  ;;  %v2336_v14 = vld [vmem:[%s2787_s10 + $0x8c] sm:$0xf]  ;;  %v1813_v15 = vld [vmem:[%s2787_s10 + $0x98] sm:$0xf0]  ;;  %v1812_v18 = vor.u32 %v2338_v10, %v1811_v9 }
  0x4d   : > { %811 = vmatpush.bf16.msra.mxu3 %v1872_v41  ;;  %v2368_v16 = vld [vmem:[%s2787_s10 + $0x18c] sm:$0xf]  ;;  %v1941_v17 = vld [vmem:[%s2787_s10 + $0x198] sm:$0xf0]  ;;  %v1940_v19 = vor.u32 %v2370_v13, %v1939_v11  ;;  %v1816_v20 = vor.u32 %v2336_v14, %v1813_v15  ;;  %v1795_v21 = vld [vmem:[%s2787_s10 + $0x68] sm:$0xf] }
  0x4e   : > { %773 = vmatmul.bf16.vlgmr.msra.gmra.mxu0 %v2888_v63  ;;  %v2334_v22 = vld [vmem:[%s2787_s10 + $0x74] sm:$0xf0]  ;;  %v1923_v23 = vld [vmem:[%s2787_s10 + $0x168] sm:$0xf]  ;;  %v1944_v24 = vor.u32 %v2368_v16, %v1941_v17  ;;  %v2332_v26 = vld [vmem:[%s2787_s10 + $0x6c] sm:$0xf] }
  0x4f   : > { %817 = vmatpush.bf16.msrb.mxu0 %v1860_v42  ;;  %799 = vmatmul.bf16.vlgmr.msra.gmra.mxu2 %v2888_v63  ;;  %v2366_v25 = vld [vmem:[%s2787_s10 + $0x174] sm:$0xf0]  ;;  %v1797_v27 = vld [vmem:[%s2787_s10 + $0x78] sm:$0xf0]  ;;  %v2364_v28 = vld [vmem:[%s2787_s10 + $0x16c] sm:$0xf]  ;;  %v1796_v30 = vor.u32 %v2334_v22, %v1795_v21 }
  0x50   : > { %830 = vmatpush.bf16.msrb.mxu1 %v1988_v43  ;;  %843 = vmatpush.bf16.msrb.mxu2 %v1864_v44  ;;  %v1925_v29 = vld [vmem:[%s2787_s10 + $0x178] sm:$0xf0]  ;;  %v1924_v31 = vor.u32 %v2366_v25, %v1923_v23  ;;  %v1800_v32 = vor.u32 %v2332_v26, %v1797_v27  ;;  %v1779_v33 = vld [vmem:[%s2787_s10 + $0x48] sm:$0xf]  ;;  %v2330_v34 = vld [vmem:[%s2787_s10 + $0x54] sm:$0xf0] }
  0x51   : > { %856 = vmatpush.bf16.msrb.mxu3 %v1992_v48  ;;  %786 = vmatmul.bf16.vlgmr.msra.gmra.mxu1 %v2893_v3  ;;  %v1907_v35 = vld [vmem:[%s2787_s10 + $0x148] sm:$0xf]  ;;  %v1928_v36 = vor.u32 %v2364_v28, %v1925_v29  ;;  %v2362_v37 = vld [vmem:[%s2787_s10 + $0x154] sm:$0xf0]  ;;  %v2328_v38 = vld [vmem:[%s2787_s10 + $0x4c] sm:$0xf]  ;;  %v1780_v42 = vor.u32 %v2330_v34, %v1779_v33 }
  0x52   : > { %812 = vmatmul.bf16.vlgmr.msra.gmra.mxu3 %v2893_v3  ;;  %v1781_v39 = vld [vmem:[%s2787_s10 + $0x58] sm:$0xf0]  ;;  %v2360_v40 = vld [vmem:[%s2787_s10 + $0x14c] sm:$0xf]  ;;  %v1908_v43 = vor.u32 %v2362_v37, %v1907_v35  ;;  %v1763_v45 = vld [vmem:[%s2787_s10 + $0x28] sm:$0xf] }
  0x53   : > { %818 = vmatpush.bf16.msrb.mxu0 %v1844_v54  ;;  %v1909_v41 = vld [vmem:[%s2787_s10 + $0x158] sm:$0xf0]  ;;  %v1784_v44 = vor.u32 %v2328_v38, %v1781_v39  ;;  %v2326_v46 = vld [vmem:[%s2787_s10 + $0x34] sm:$0xf0]  ;;  %v1891_v47 = vld [vmem:[%s2787_s10 + $0x128] sm:$0xf] }
  0x54   : > { %831 = vmatpush.bf16.msrb.mxu1 %v1972_v58  ;;  %844 = vmatpush.bf16.msrb.mxu2 %v1848_v59  ;;  %v1912_v48 = vor.u32 %v2360_v40, %v1909_v41  ;;  %v2358_v49 = vld [vmem:[%s2787_s10 + $0x134] sm:$0xf0]  ;;  %v2324_v50 = vld [vmem:[%s2787_s10 + $0x2c] sm:$0xf]  ;;  %v1765_v51 = vld [vmem:[%s2787_s10 + $0x38] sm:$0xf0]  ;;  %v1764_v54 = vor.u32 %v2326_v46, %v1763_v45 }
  0x55   : > { %857 = vmatpush.bf16.msrb.mxu3 %v1976_v62  ;;  %v2356_v52 = vld [vmem:[%s2787_s10 + $0x12c] sm:$0xf]  ;;  %v1893_v53 = vld [vmem:[%s2787_s10 + $0x138] sm:$0xf0]  ;;  %v1892_v55 = vor.u32 %v2358_v49, %v1891_v47  ;;  %v1768_v56 = vor.u32 %v2324_v50, %v1765_v51  ;;  %v1747_v57 = vld [vmem:[%s2787_s10 + $0x8] sm:$0xf] }
  0x56   : > { %v2322_v58 = vld [vmem:[%s2787_s10 + $0x14] sm:$0xf0]  ;;  %v1875_v59 = vld [vmem:[%s2787_s10 + $0x108] sm:$0xf]  ;;  %v1896_v60 = vor.u32 %v2356_v52, %v1893_v53  ;;  %v2320_v62 = vld [vmem:[%s2787_s10 + $0xc] sm:$0xf] }
  0x57   : > { %819 = vmatpush.bf16.msrb.mxu0 %v1828_v6  ;;  %v2354_v61 = vld [vmem:[%s2787_s10 + $0x114] sm:$0xf0]  ;;  %v1749_v0 = vld [vmem:[%s2787_s10 + $0x18] sm:$0xf0]  ;;  %v2352_v1 = vld [vmem:[%s2787_s10 + $0x10c] sm:$0xf]  ;;  %v1748_v4 = vor.u32 %v2322_v58, %v1747_v57 }
  0x58   : > { %832 = vmatpush.bf16.msrb.mxu1 %v1956_v7  ;;  %845 = vmatpush.bf16.msrb.mxu2 %v1832_v8  ;;  %v1877_v2 = vld [vmem:[%s2787_s10 + $0x118] sm:$0xf0]  ;;  %v1876_v5 = vor.u32 %v2354_v61, %v1875_v59  ;;  %v1752_v6 = vor.u32 %v2320_v62, %v1749_v0  ;;  %vm876_vm0 = vcmask 1041408   ;;  %vm878_vm1 = vcmask 1045508   ;;  %p1993_p1 = scmp.ne.s32.totalorder %s2649_s27, 3 }
  0x59   : > { %858 = vmatpush.bf16.msrb.mxu3 %v1960_v12  ;;  %v1880_v7 = vor.u32 %v2352_v1, %v1877_v2  ;;  %vm880_vm2 = vcmask 1043456   ;;  %v371_v27 = vld [vmem:[#allocation2] sm:$0xff] }
  0x5b   : > { %820 = vmatpush.bf16.msrb.mxu0 %v1812_v18 }
  0x5c   : > { %833 = vmatpush.bf16.msrb.mxu1 %v1940_v19  ;;  %846 = vmatpush.bf16.msrb.mxu2 %v1816_v20 }
  0x5d   : > { %859 = vmatpush.bf16.msrb.mxu3 %v1944_v24 }
  0x5f   : > { %821 = vmatpush.bf16.msrb.mxu0 %v1796_v30 }
  0x60   : > { %834 = vmatpush.bf16.msrb.mxu1 %v1924_v31  ;;  %847 = vmatpush.bf16.msrb.mxu2 %v1800_v32 }
  0x61   : > { %860 = vmatpush.bf16.msrb.mxu3 %v1928_v36 }
  0x63   : > { %822 = vmatpush.bf16.msrb.mxu0 %v1780_v42 }
  0x64   : > { %835 = vmatpush.bf16.msrb.mxu1 %v1908_v43  ;;  %848 = vmatpush.bf16.msrb.mxu2 %v1784_v44 }
  0x65   : > { %861 = vmatpush.bf16.msrb.mxu3 %v1912_v48 }
  0x67   : > { %823 = vmatpush.bf16.msrb.mxu0 %v1764_v54 }
  0x68   : > { %836 = vmatpush.bf16.msrb.mxu1 %v1892_v55  ;;  %849 = vmatpush.bf16.msrb.mxu2 %v1768_v56 }
  0x69   : > { %862 = vmatpush.bf16.msrb.mxu3 %v1896_v60 }
  0x6b   : > { %824 = vmatpush.bf16.msrb.mxu0 %v1748_v4 }
  0x6c   : > { %837 = vmatpush.bf16.msrb.mxu1 %v1876_v5  ;;  %850 = vmatpush.bf16.msrb.mxu2 %v1752_v6 }
  0x6d   : > { %863 = vmatpush.bf16.msrb.mxu3 %v1880_v7 }
  0x6e   : > { %825 = vmatmul.bf16.vlgmr.msrb.gmra.mxu0 %v2888_v63 }
  0x6f   : > { %838 = vmatmul.bf16.vlgmr.msrb.gmra.mxu1 %v2893_v3  ;;  %851 = vmatmul.bf16.vlgmr.msrb.gmra.mxu2 %v2888_v63 }
  0x70   : > { %864 = vmatmul.bf16.vlgmr.msrb.gmra.mxu3 %v2893_v3 }
  0xcb   : > { %v774_v8 = vpop.f32.mrf.mxu0 }
  0xce   : > { %v787_v9 = vpop.f32.mrf.mxu1 }
  0xcf   : > { %v788_v23 = vadd.f32 %v787_v9, %v774_v8 }
  0xd2   : > { %v800_v10 = vpop.f32.mrf.mxu2 }
  0xd3   : > { %v776_v12 = vpop.f32.mrf.mxu0 }
  0xd5   : > { %v813_v11 = vpop.f32.mrf.mxu3 }
  0xd6   : > { %v789_v13 = vpop.f32.mrf.mxu1  ;;  %v814_v18 = vadd.f32 %v813_v11, %v800_v10 }
  0xd8   : > { %v873_v24 = vrot.slane %v814_v18, 6 }
  0xda   : > { %v802_v14 = vpop.f32.mrf.mxu2  ;;  %v877_v28 = vsel %vm876_vm0, %v788_v23, %v873_v24 }
  0xdd   : > { %v815_v15 = vpop.f32.mrf.mxu3 }
  0xeb   : > { %v826_v16 = vpop.f32.mrf.mxu0 }
  0xec   : > { %v839_v17 = vpop.f32.mrf.mxu1 }
  0xed   : > { %v840_v19 = vadd.f32 %v839_v17, %v826_v16 }
  0xef   : > { %v874_v63 = vrot.slane %v840_v19, 4 }
  0xf2   : > { %v852_v20 = vpop.f32.mrf.mxu2 }
  0xf3   : > { %v865_v21 = vpop.f32.mrf.mxu3  ;;  %v828_v22 = vpop.f32.mrf.mxu0 }
  0xf4   : > { %v866_v25 = vadd.f32 %v865_v21, %v852_v20  ;;  %v841_v3 = vpop.f32.mrf.mxu1 }
  0xf6   : > { %v875_v26 = vrot.slane %v866_v25, 2 }
  0xf8   : > { %v879_v29 = vsel %vm878_vm1, %v874_v63, %v875_v26  ;;  %888 = sbr.rel (%p1993_p1) target bundleno = 753 (0x2f1), region = 64 }
  0xf9   : > { %v881_v30 = vsel %vm880_vm2, %v877_v28, %v879_v29 }
  0xfa   : > { %v883_v31 = vadd.f32 %v881_v30, %v371_v27  ;;  %v854_v32 = vpop.f32.mrf.mxu2 }
  0xfb   : > { %v867_v33 = vpop.f32.mrf.mxu3 }
  0xfc   : > { %884 = vst [vmem:[#allocation2] sm:$0xff] %v883_v31 }
  0xfd   : > { %v2052_v34 = vld [vmem:[#allocation5 + $0x70] sm:$0xf]  ;;  %v2398_v35 = vld [vmem:[#allocation5 + $0x74] sm:$0xf0]  ;;  %v2044_v45 = vld [vmem:[#allocation5 + $0x60] sm:$0xf] }
  0xfe   : > { %v2116_v36 = vld [vmem:[#allocation5 + $0xf0] sm:$0xf]  ;;  %v2053_v37 = vor.u32 %v2398_v35, %v2052_v34  ;;  %v2414_v38 = vld [vmem:[#allocation5 + $0xf4] sm:$0xf0]  ;;  %v2396_v47 = vld [vmem:[#allocation5 + $0x64] sm:$0xf0] }
  0xff   : > { %v2180_v39 = vld [vmem:[#allocation5 + $0x170] sm:$0xf]  ;;  %v2430_v40 = vld [vmem:[#allocation5 + $0x174] sm:$0xf0]  ;;  %v2117_v41 = vor.u32 %v2414_v38, %v2116_v36  ;;  %v2108_v48 = vld [vmem:[#allocation5 + $0xe0] sm:$0xf]  ;;  %v2045_v50 = vor.u32 %v2396_v47, %v2044_v45 }
 0x100   : > { %v2181_v42 = vor.u32 %v2430_v40, %v2180_v39  ;;  %v2244_v43 = vld [vmem:[#allocation5 + $0x1f0] sm:$0xf]  ;;  %v2446_v44 = vld [vmem:[#allocation5 + $0x1f4] sm:$0xf0]  ;;  %1309 = vmatpush.bf16.msra.mxu0 %v2053_v37  ;;  %v2412_v49 = vld [vmem:[#allocation5 + $0xe4] sm:$0xf0] }
 0x101   : > { %v2245_v46 = vor.u32 %v2446_v44, %v2244_v43  ;;  %1322 = vmatpush.bf16.msra.mxu1 %v2117_v41  ;;  %v2109_v51 = vor.u32 %v2412_v49, %v2108_v48  ;;  %v2172_v52 = vld [vmem:[#allocation5 + $0x160] sm:$0xf]  ;;  %v2428_v53 = vld [vmem:[#allocation5 + $0x164] sm:$0xf0]  ;;  %v2036_v57 = vld [vmem:[#allocation5 + $0x50] sm:$0xf] }
 0x102   : > { %1335 = vmatpush.bf16.msra.mxu2 %v2181_v42  ;;  %v2236_v54 = vld [vmem:[#allocation5 + $0x1e0] sm:$0xf]  ;;  %v2173_v55 = vor.u32 %v2428_v53, %v2172_v52  ;;  %v2444_v56 = vld [vmem:[#allocation5 + $0x1e4] sm:$0xf0]  ;;  %v2394_v58 = vld [vmem:[#allocation5 + $0x54] sm:$0xf0] }
 0x103   : > { %1348 = vmatpush.bf16.msra.mxu3 %v2245_v46  ;;  %v2237_v59 = vor.u32 %v2444_v56, %v2236_v54  ;;  %v2100_v60 = vld [vmem:[#allocation5 + $0xd0] sm:$0xf]  ;;  %v2410_v61 = vld [vmem:[#allocation5 + $0xd4] sm:$0xf0]  ;;  %v2037_v0 = vor.u32 %v2394_v58, %v2036_v57  ;;  %v2028_v7 = vld [vmem:[#allocation5 + $0x40] sm:$0xf] }
 0x104   : > { %v2164_v62 = vld [vmem:[#allocation5 + $0x150] sm:$0xf]  ;;  %1310 = vmatpush.bf16.msra.mxu0 %v2045_v50  ;;  %v2426_v1 = vld [vmem:[#allocation5 + $0x154] sm:$0xf0]  ;;  %v2101_v5 = vor.u32 %v2410_v61, %v2100_v60  ;;  %v2392_v8 = vld [vmem:[#allocation5 + $0x44] sm:$0xf0] }
 0x105   : > { %v2228_v2 = vld [vmem:[#allocation5 + $0x1d0] sm:$0xf]  ;;  %v2442_v4 = vld [vmem:[#allocation5 + $0x1d4] sm:$0xf0]  ;;  %1323 = vmatpush.bf16.msra.mxu1 %v2109_v51  ;;  %v2165_v6 = vor.u32 %v2426_v1, %v2164_v62  ;;  %v2092_v9 = vld [vmem:[#allocation5 + $0xc0] sm:$0xf]  ;;  %v2029_v16 = vor.u32 %v2392_v8, %v2028_v7 }
 0x106   : > { %1336 = vmatpush.bf16.msra.mxu2 %v2173_v55  ;;  %v2229_v10 = vor.u32 %v2442_v4, %v2228_v2  ;;  %v2408_v11 = vld [vmem:[#allocation5 + $0xc4] sm:$0xf0]  ;;  %v2156_v12 = vld [vmem:[#allocation5 + $0x140] sm:$0xf]  ;;  %v2020_v19 = vld [vmem:[#allocation5 + $0x30] sm:$0xf] }
 0x107   : > { %1349 = vmatpush.bf16.msra.mxu3 %v2237_v59  ;;  %v2424_v13 = vld [vmem:[#allocation5 + $0x144] sm:$0xf0]  ;;  %v2220_v14 = vld [vmem:[#allocation5 + $0x1c0] sm:$0xf]  ;;  %v2093_v17 = vor.u32 %v2408_v11, %v2092_v9  ;;  %v2390_v20 = vld [vmem:[#allocation5 + $0x34] sm:$0xf0] }
 0x108   : > { %v2440_v15 = vld [vmem:[#allocation5 + $0x1c4] sm:$0xf0]  ;;  %1311 = vmatpush.bf16.msra.mxu0 %v2037_v0  ;;  %v2157_v18 = vor.u32 %v2424_v13, %v2156_v12  ;;  %v2084_v21 = vld [vmem:[#allocation5 + $0xb0] sm:$0xf]  ;;  %v2406_v23 = vld [vmem:[#allocation5 + $0xb4] sm:$0xf0]  ;;  %v2021_v26 = vor.u32 %v2390_v20, %v2020_v19 }
 0x109   : > { %1324 = vmatpush.bf16.msra.mxu1 %v2101_v5  ;;  %v2221_v22 = vor.u32 %v2440_v15, %v2220_v14  ;;  %v2148_v24 = vld [vmem:[#allocation5 + $0x130] sm:$0xf]  ;;  %v2422_v63 = vld [vmem:[#allocation5 + $0x134] sm:$0xf0]  ;;  %v2085_v27 = vor.u32 %v2406_v23, %v2084_v21  ;;  %v2012_v29 = vld [vmem:[#allocation5 + $0x20] sm:$0xf] }
 0x10a   : > { %1337 = vmatpush.bf16.msra.mxu2 %v2165_v6  ;;  %v2212_v25 = vld [vmem:[#allocation5 + $0x1b0] sm:$0xf]  ;;  %v2438_v3 = vld [vmem:[#allocation5 + $0x1b4] sm:$0xf0]  ;;  %v2149_v28 = vor.u32 %v2422_v63, %v2148_v24  ;;  %v2388_v30 = vld [vmem:[#allocation5 + $0x24] sm:$0xf0] }
 0x10b   : > { %1350 = vmatpush.bf16.msra.mxu3 %v2229_v10  ;;  %v2076_v31 = vld [vmem:[#allocation5 + $0xa0] sm:$0xf]  ;;  %v2213_v32 = vor.u32 %v2438_v3, %v2212_v25  ;;  %v2404_v33 = vld [vmem:[#allocation5 + $0xa4] sm:$0xf0]  ;;  %v2013_v38 = vor.u32 %v2388_v30, %v2012_v29  ;;  %v2004_v41 = vld [vmem:[#allocation5 + $0x10] sm:$0xf] }
 0x10c   : > { %1312 = vmatpush.bf16.msra.mxu0 %v2029_v16  ;;  %v2140_v34 = vld [vmem:[#allocation5 + $0x120] sm:$0xf]  ;;  %v2420_v35 = vld [vmem:[#allocation5 + $0x124] sm:$0xf0]  ;;  %v2077_v39 = vor.u32 %v2404_v33, %v2076_v31  ;;  %v2386_v42 = vld [vmem:[#allocation5 + $0x14] sm:$0xf0] }
 0x10d   : > { %1325 = vmatpush.bf16.msra.mxu1 %v2093_v17  ;;  %v2204_v36 = vld [vmem:[#allocation5 + $0x1a0] sm:$0xf]  ;;  %v2436_v37 = vld [vmem:[#allocation5 + $0x1a4] sm:$0xf0]  ;;  %v2141_v40 = vor.u32 %v2420_v35, %v2140_v34  ;;  %v2068_v43 = vld [vmem:[#allocation5 + $0x90] sm:$0xf]  ;;  %v2005_v51 = vor.u32 %v2386_v42, %v2004_v41 }
 0x10e   : > { %1338 = vmatpush.bf16.msra.mxu2 %v2157_v18  ;;  %v2205_v44 = vor.u32 %v2436_v37, %v2204_v36  ;;  %v2402_v45 = vld [vmem:[#allocation5 + $0x94] sm:$0xf0]  ;;  %v2132_v46 = vld [vmem:[#allocation5 + $0x110] sm:$0xf]  ;;  %v1996_v50 = vld [vmem:[#allocation5] sm:$0xf] }
 0x10f   : > { %1351 = vmatpush.bf16.msra.mxu3 %v2221_v22  ;;  %v2418_v47 = vld [vmem:[#allocation5 + $0x114] sm:$0xf0]  ;;  %v2196_v48 = vld [vmem:[#allocation5 + $0x190] sm:$0xf]  ;;  %v2384_v52 = vld [vmem:[#allocation5 + $0x4] sm:$0xf0]  ;;  %v2069_v55 = vor.u32 %v2402_v45, %v2068_v43 }
 0x110   : > { %1313 = vmatpush.bf16.msra.mxu0 %v2021_v26  ;;  %v2434_v49 = vld [vmem:[#allocation5 + $0x194] sm:$0xf0]  ;;  %v2060_v53 = vld [vmem:[#allocation5 + $0x80] sm:$0xf]  ;;  %v2400_v54 = vld [vmem:[#allocation5 + $0x84] sm:$0xf0]  ;;  %v2133_v56 = vor.u32 %v2418_v47, %v2132_v46  ;;  %v1997_v5 = vor.u32 %v2384_v52, %v1996_v50 }
 0x111   : > { %1326 = vmatpush.bf16.msra.mxu1 %v2085_v27  ;;  %v2124_v57 = vld [vmem:[#allocation5 + $0x100] sm:$0xf]  ;;  %v2416_v58 = vld [vmem:[#allocation5 + $0x104] sm:$0xf0]  ;;  %v2197_v60 = vor.u32 %v2434_v49, %v2196_v48  ;;  %v2397_v62 = vld [vmem:[#allocation5 + $0x74] sm:$0xf]  ;;  %v2061_v6 = vor.u32 %v2400_v54, %v2060_v53 }
 0x112   : > { %1339 = vmatpush.bf16.msra.mxu2 %v2149_v28  ;;  %v2188_v59 = vld [vmem:[#allocation5 + $0x180] sm:$0xf]  ;;  %v2432_v61 = vld [vmem:[#allocation5 + $0x184] sm:$0xf0]  ;;  %v2054_v0 = vld [vmem:[#allocation5 + $0x78] sm:$0xf0]  ;;  %v2125_v7 = vor.u32 %v2416_v58, %v2124_v57 }
 0x113   : > { %1352 = vmatpush.bf16.msra.mxu3 %v2213_v32  ;;  %v2413_v1 = vld [vmem:[#allocation5 + $0xf4] sm:$0xf]  ;;  %v2118_v2 = vld [vmem:[#allocation5 + $0xf8] sm:$0xf0]  ;;  %v890_v10 = vld [vmem:[%s3047_s2] sm:$0xf]  ;;  %v2189_v16 = vor.u32 %v2432_v61, %v2188_v59  ;;  %v2057_v17 = vor.u32 %v2397_v62, %v2054_v0 }
 0x114   : > { %1314 = vmatpush.bf16.msra.mxu0 %v2013_v38  ;;  %v2429_v4 = vld [vmem:[#allocation5 + $0x174] sm:$0xf]  ;;  %v2182_v8 = vld [vmem:[#allocation5 + $0x178] sm:$0xf0]  ;;  %v892_v12 = vperm.slane %v890_v10, 0  ;;  %v893_v13 = vperm.slane %v890_v10, 1  ;;  %v2121_v18 = vor.u32 %v2413_v1, %v2118_v2 }
 0x115   : > { %1327 = vmatpush.bf16.msra.mxu1 %v2077_v39  ;;  %v2445_v9 = vld [vmem:[#allocation5 + $0x1f4] sm:$0xf]  ;;  %v2246_v11 = vld [vmem:[#allocation5 + $0x1f8] sm:$0xf0]  ;;  %v894_v14 = vperm.slane %v890_v10, 2  ;;  %v895_v15 = vperm.slane %v890_v10, 3  ;;  %v2185_v22 = vor.u32 %v2429_v4, %v2182_v8 }
 0x116   : > { %1340 = vmatpush.bf16.msra.mxu2 %v2141_v40  ;;  %v2395_v19 = vld [vmem:[#allocation5 + $0x64] sm:$0xf]  ;;  %v2046_v20 = vld [vmem:[#allocation5 + $0x68] sm:$0xf0]  ;;  %v896_v24 = vrot.slane %v893_v13, 6  ;;  %v2249_v3 = vor.u32 %v2445_v9, %v2246_v11  ;;  %v889_v28 = vld [vmem:[#allocation2] sm:$0xff] }
 0x117   : > { %1353 = vmatpush.bf16.msra.mxu3 %v2205_v44  ;;  %v2411_v21 = vld [vmem:[#allocation5 + $0xe4] sm:$0xf]  ;;  %v2110_v23 = vld [vmem:[#allocation5 + $0xe8] sm:$0xf0]  ;;  %v897_v63 = vrot.slane %v894_v14, 4  ;;  %v898_v25 = vrot.slane %v895_v15, 2  ;;  %v2049_v33 = vor.u32 %v2395_v19, %v2046_v20 }
 0x118   : > { %1315 = vmatpush.bf16.msra.mxu0 %v2005_v51  ;;  %v2427_v26 = vld [vmem:[#allocation5 + $0x164] sm:$0xf]  ;;  %v2174_v27 = vld [vmem:[#allocation5 + $0x168] sm:$0xf0]  ;;  %v899_v31 = vsel %vm876_vm0, %v892_v12, %v896_v24  ;;  %v2113_v35 = vor.u32 %v2411_v21, %v2110_v23  ;;  %v2393_v38 = vld [vmem:[#allocation5 + $0x54] sm:$0xf] }
 0x119   : > { %1328 = vmatpush.bf16.msra.mxu1 %v2069_v55  ;;  %v2443_v29 = vld [vmem:[#allocation5 + $0x1e4] sm:$0xf]  ;;  %v2238_v30 = vld [vmem:[#allocation5 + $0x1e8] sm:$0xf0]  ;;  %v900_v32 = vsel %vm878_vm1, %v897_v63, %v898_v25  ;;  %v2177_v36 = vor.u32 %v2427_v26, %v2174_v27  ;;  %v2038_v39 = vld [vmem:[#allocation5 + $0x58] sm:$0xf0] }
 0x11a   : > { %1341 = vmatpush.bf16.msra.mxu2 %v2133_v56  ;;  %v901_v34 = vsel %vm880_vm2, %v899_v31, %v900_v32  ;;  %v2409_v40 = vld [vmem:[#allocation5 + $0xd4] sm:$0xf]  ;;  %v2241_v41 = vor.u32 %v2443_v29, %v2238_v30  ;;  %v2102_v42 = vld [vmem:[#allocation5 + $0xd8] sm:$0xf0]  ;;  %v2041_v48 = vor.u32 %v2393_v38, %v2038_v39  ;;  %v2391_v49 = vld [vmem:[#allocation5 + $0x44] sm:$0xf] }
 0x11b   : > { %1354 = vmatpush.bf16.msra.mxu3 %v2197_v60  ;;  %v903_v37 = vadd.f32 %v901_v34, %v889_v28  ;;  %v2425_v43 = vld [vmem:[#allocation5 + $0x154] sm:$0xf]  ;;  %v2166_v44 = vld [vmem:[#allocation5 + $0x158] sm:$0xf0]  ;;  %v2105_v50 = vor.u32 %v2409_v40, %v2102_v42  ;;  %v2030_v52 = vld [vmem:[#allocation5 + $0x48] sm:$0xf0] }
 0x11c   : > { %1316 = vmatpush.bf16.msra.mxu0 %v1997_v5  ;;  %v2441_v46 = vld [vmem:[#allocation5 + $0x1d4] sm:$0xf]  ;;  %v2230_v47 = vld [vmem:[#allocation5 + $0x1d8] sm:$0xf0]  ;;  %v2169_v51 = vor.u32 %v2425_v43, %v2166_v44  ;;  %v2407_v53 = vld [vmem:[#allocation5 + $0xc4] sm:$0xf]  ;;  %v2033_v60 = vor.u32 %v2391_v49, %v2030_v52 }
 0x11d   : > { %1329 = vmatpush.bf16.msra.mxu1 %v2061_v6  ;;  %v904_v45 = vmax.f32 %v903_v37, 0.0  ;;  %v2233_v54 = vor.u32 %v2441_v46, %v2230_v47  ;;  %v2094_v55 = vld [vmem:[#allocation5 + $0xc8] sm:$0xf0]  ;;  %v2423_v56 = vld [vmem:[#allocation5 + $0x144] sm:$0xf] }
 0x11e   : > { %1342 = vmatpush.bf16.msra.mxu2 %v2125_v7  ;;  %v2158_v57 = vld [vmem:[#allocation5 + $0x148] sm:$0xf0]  ;;  %v2439_v58 = vld [vmem:[#allocation5 + $0x1c4] sm:$0xf]  ;;  %v2097_v61 = vor.u32 %v2407_v53, %v2094_v55  ;;  %v2389_v0 = vld [vmem:[#allocation5 + $0x34] sm:$0xf] }
 0x11f   : > { %1355 = vmatpush.bf16.msra.mxu3 %v2189_v16  ;;  %906 = vst [vmem:[#allocation1] ss:$4 sm:$0xff] %v904_v45  ;;  %v2222_v59 = vld [vmem:[#allocation5 + $0x1c8] sm:$0xf0]  ;;  %v2161_v62 = vor.u32 %v2423_v56, %v2158_v57  ;;  %v2022_v1 = vld [vmem:[#allocation5 + $0x38] sm:$0xf0] }
 0x120   : > { %1361 = vmatpush.bf16.msrb.mxu0 %v2057_v17  ;;  %v2225_v2 = vor.u32 %v2439_v58, %v2222_v59  ;;  %v2405_v4 = vld [vmem:[#allocation5 + $0xb4] sm:$0xf]  ;;  %v2086_v5 = vld [vmem:[#allocation5 + $0xb8] sm:$0xf0]  ;;  %v2025_v12 = vor.u32 %v2389_v0, %v2022_v1  ;;  %v2387_v13 = vld [vmem:[#allocation5 + $0x24] sm:$0xf] }
 0x121   : > { %1374 = vmatpush.bf16.msrb.mxu1 %v2121_v18  ;;  %v2421_v6 = vld [vmem:[#allocation5 + $0x134] sm:$0xf]  ;;  %v2150_v7 = vld [vmem:[#allocation5 + $0x138] sm:$0xf0]  ;;  %v2014_v14 = vld [vmem:[#allocation5 + $0x28] sm:$0xf0]  ;;  %v2089_v19 = vor.u32 %v2405_v4, %v2086_v5 }
 0x122   : > { %1387 = vmatpush.bf16.msrb.mxu2 %v2185_v22  ;;  %v2437_v8 = vld [vmem:[#allocation5 + $0x1b4] sm:$0xf]  ;;  %v2214_v9 = vld [vmem:[#allocation5 + $0x1b8] sm:$0xf0]  ;;  %v2153_v22 = vor.u32 %v2421_v6, %v2150_v7  ;;  %v2403_v24 = vld [vmem:[#allocation5 + $0xa4] sm:$0xf]  ;;  %v2017_v28 = vor.u32 %v2387_v13, %v2014_v14 }
 0x123   : > { %1400 = vmatpush.bf16.msrb.mxu3 %v2249_v3  ;;  %v2217_v23 = vor.u32 %v2437_v8, %v2214_v9  ;;  %v2078_v63 = vld [vmem:[#allocation5 + $0xa8] sm:$0xf0]  ;;  %v2419_v25 = vld [vmem:[#allocation5 + $0x124] sm:$0xf]  ;;  %v2385_v30 = vld [vmem:[#allocation5 + $0x14] sm:$0xf] }
 0x124   : > { %1362 = vmatpush.bf16.msrb.mxu0 %v2049_v33  ;;  %v2142_v3 = vld [vmem:[#allocation5 + $0x128] sm:$0xf0]  ;;  %v2435_v26 = vld [vmem:[#allocation5 + $0x1a4] sm:$0xf]  ;;  %v2081_v29 = vor.u32 %v2403_v24, %v2078_v63  ;;  %v2006_v31 = vld [vmem:[#allocation5 + $0x18] sm:$0xf0] }
 0x125   : > { %1375 = vmatpush.bf16.msrb.mxu1 %v2113_v35  ;;  %v2206_v27 = vld [vmem:[#allocation5 + $0x1a8] sm:$0xf0]  ;;  %v2145_v32 = vor.u32 %v2419_v25, %v2142_v3  ;;  %v2401_v34 = vld [vmem:[#allocation5 + $0x94] sm:$0xf]  ;;  %v2070_v35 = vld [vmem:[#allocation5 + $0x98] sm:$0xf0]  ;;  %v2009_v40 = vor.u32 %v2385_v30, %v2006_v31 }
 0x126   : > { %1388 = vmatpush.bf16.msrb.mxu2 %v2177_v36  ;;  %v909_v10 = vld.sshfl [vmem:[#allocation1 + $0x10] sm:$0xff pattern:$0x73625140]  ;;  %v907_v11 = vld.sshfl [vmem:[#allocation1] sm:$0xff pattern:$0x73625140]  ;;  %v2209_v33 = vor.u32 %v2435_v26, %v2206_v27 }
 0x127   : > { %1401 = vmatpush.bf16.msrb.mxu3 %v2241_v41  ;;  %v2955_v15 = vpack.c.bf16 %v909_v10, %v909_v10  ;;  %v2957_v16 = vpack.c.bf16 %v907_v11, %v907_v11  ;;  %v910_v17 = vld.sshfl [vmem:[#allocation1 + $0x18] sm:$0xff pattern:$0x73625140]  ;;  %v908_v18 = vld.sshfl [vmem:[#allocation1 + $0x8] sm:$0xff pattern:$0x73625140]  ;;  %v2073_v41 = vor.u32 %v2401_v34, %v2070_v35 }
 0x128   : > { %1363 = vmatpush.bf16.msrb.mxu0 %v2041_v48  ;;  %v2959_v20 = vpack.c.bf16 %v910_v17, %v910_v17  ;;  %v916_v21 = vpack.c.bf16 %v908_v18, %v908_v18  ;;  %v2417_v36 = vld [vmem:[#allocation5 + $0x114] sm:$0xf]  ;;  %v2134_v37 = vld [vmem:[#allocation5 + $0x118] sm:$0xf0]  ;;  %v2383_v42 = vld [vmem:[#allocation5 + $0x4] sm:$0xf] }
 0x129   : > { %1376 = vmatpush.bf16.msrb.mxu1 %v2105_v50  ;;  %1343 = vmatmul.bf16.vlgmr.msra.gmra.mxu2 %v2955_v15  ;;  %v2433_v38 = vld [vmem:[#allocation5 + $0x194] sm:$0xf]  ;;  %v2198_v39 = vld [vmem:[#allocation5 + $0x198] sm:$0xf0]  ;;  %v1998_v43 = vld [vmem:[#allocation5 + $0x8] sm:$0xf0]  ;;  %v2137_v44 = vor.u32 %v2417_v36, %v2134_v37 }
 0x12a   : > { %1389 = vmatpush.bf16.msrb.mxu2 %v2169_v51  ;;  %1317 = vmatmul.bf16.vlgmr.msra.gmra.mxu0 %v2957_v16  ;;  %v2201_v45 = vor.u32 %v2433_v38, %v2198_v39  ;;  %v2399_v46 = vld [vmem:[#allocation5 + $0x84] sm:$0xf]  ;;  %v2062_v47 = vld [vmem:[#allocation5 + $0x88] sm:$0xf0]  ;;  %v2001_v52 = vor.u32 %v2383_v42, %v1998_v43  ;;  %v2452_v58 = vld [vmem:[%s3050_s5 + $0x28] sm:$0xff] }
 0x12b   : > { %1402 = vmatpush.bf16.msrb.mxu3 %v2233_v54  ;;  %1330 = vmatmul.bf16.vlgmr.msra.gmra.mxu1 %v916_v21  ;;  %v2415_v48 = vld [vmem:[#allocation5 + $0x104] sm:$0xf]  ;;  %v2126_v49 = vld [vmem:[#allocation5 + $0x108] sm:$0xf0]  ;;  %v2065_v53 = vor.u32 %v2399_v46, %v2062_v47  ;;  %v2451_v59 = vld [vmem:[%s3050_s5 + $0x20] sm:$0xff] }
 0x12c   : > { %1364 = vmatpush.bf16.msrb.mxu0 %v2033_v60  ;;  %1356 = vmatmul.bf16.vlgmr.msra.gmra.mxu3 %v2959_v20  ;;  %v2431_v50 = vld [vmem:[#allocation5 + $0x184] sm:$0xf]  ;;  %v2190_v51 = vld [vmem:[#allocation5 + $0x188] sm:$0xf0]  ;;  %v2129_v54 = vor.u32 %v2415_v48, %v2126_v49  ;;  %v2447_v1 = vld [vmem:[%s3050_s5] sm:$0xff] }
 0x12d   : > { %1377 = vmatpush.bf16.msrb.mxu1 %v2097_v61  ;;  %v2193_v55 = vor.u32 %v2431_v50, %v2190_v51  ;;  %v2454_v56 = vld [vmem:[%s3050_s5 + $0x38] sm:$0xff]  ;;  %v2453_v57 = vld [vmem:[%s3050_s5 + $0x30] sm:$0xff]  ;;  %v2460_v4 = vld [vmem:[%s3050_s5 + $0x68] sm:$0xff] }
 0x12e   : > { %1390 = vmatpush.bf16.msrb.mxu2 %v2161_v62  ;;  %v2450_v60 = vld [vmem:[%s3050_s5 + $0x18] sm:$0xff]  ;;  %v2449_v61 = vld [vmem:[%s3050_s5 + $0x10] sm:$0xff]  ;;  %v2448_v62 = vld [vmem:[%s3050_s5 + $0x8] sm:$0xff] }
 0x12f   : > { %1403 = vmatpush.bf16.msrb.mxu3 %v2225_v2  ;;  %v2462_v0 = vld [vmem:[%s3050_s5 + $0x78] sm:$0xff]  ;;  %v2461_v2 = vld [vmem:[%s3050_s5 + $0x70] sm:$0xff]  ;;  %v2459_v5 = vld [vmem:[%s3050_s5 + $0x60] sm:$0xff] }
 0x130   : > { %1365 = vmatpush.bf16.msrb.mxu0 %v2025_v12  ;;  %v2458_v6 = vld [vmem:[%s3050_s5 + $0x58] sm:$0xff]  ;;  %v2457_v7 = vld [vmem:[%s3050_s5 + $0x50] sm:$0xff]  ;;  %v983_v8 = vld [vmem:[%s3049_s4] sm:$0x3] }
 0x131   : > { %1378 = vmatpush.bf16.msrb.mxu1 %v2089_v19  ;;  %v985_v9 = vperm.slane %v983_v8, 0  ;;  %v2456_v10 = vld [vmem:[%s3050_s5 + $0x48] sm:$0xff]  ;;  %v2455_v12 = vld [vmem:[%s3050_s5 + $0x40] sm:$0xff]  ;;  %v986_v63 = vperm.slane %v983_v8, 1 }
 0x132   : > { %1391 = vmatpush.bf16.msrb.mxu2 %v2153_v22  ;;  %v2534_v42 = vld [vmem:[%s3051_s6] ss:$0 sm:$0xff] }
 0x133   : > { %1404 = vmatpush.bf16.msrb.mxu3 %v2217_v23 }
 0x134   : > { %1366 = vmatpush.bf16.msrb.mxu0 %v2017_v28 }
 0x135   : > { %1379 = vmatpush.bf16.msrb.mxu1 %v2081_v29 }
 0x136   : > { %1392 = vmatpush.bf16.msrb.mxu2 %v2145_v32 }
 0x137   : > { %1405 = vmatpush.bf16.msrb.mxu3 %v2209_v33 }
 0x138   : > { %1367 = vmatpush.bf16.msrb.mxu0 %v2009_v40 }
 0x139   : > { %1380 = vmatpush.bf16.msrb.mxu1 %v2073_v41  ;;  %v1575_v41 = vlaneseq }
 0x13a   : > { %1393 = vmatpush.bf16.msrb.mxu2 %v2137_v44 }
 0x13b   : > { %1406 = vmatpush.bf16.msrb.mxu3 %v2201_v45  ;;  %v1576_v43 = vand.u32 127, %v1575_v41 }
 0x13c   : > { %1368 = vmatpush.bf16.msrb.mxu0 %v2001_v52 }
 0x13d   : > { %1381 = vmatpush.bf16.msrb.mxu1 %v2065_v53  ;;  %vm1577_vm3 = vcmp.lt.s32.totalorder %v1576_v43, 3  ;;  %vm1578_vm9 = vcmp.eq.s32.totalorder %v1576_v43, 3 }
 0x13e   : > { %1394 = vmatpush.bf16.msrb.mxu2 %v2129_v54 }
 0x13f   : > { %1407 = vmatpush.bf16.msrb.mxu3 %v2193_v55  ;;  %1369 = vmatmul.bf16.vlgmr.msrb.gmra.mxu0 %v2957_v16 }
 0x140   : > { %1549 = vmatpush.bf16.msra.mxu0 %v2454_v56  ;;  %1382 = vmatmul.bf16.vlgmr.msrb.gmra.mxu1 %v916_v21 }
 0x141   : > { %1395 = vmatmul.bf16.vlgmr.msrb.gmra.mxu2 %v2955_v15  ;;  %1562 = vmatpush.bf16.msra.mxu1 %v2462_v0 }
 0x142   : > { %1408 = vmatmul.bf16.vlgmr.msrb.gmra.mxu3 %v2959_v20 }
 0x144   : > { %1550 = vmatpush.bf16.msra.mxu0 %v2453_v57 }
 0x145   : > { %1563 = vmatpush.bf16.msra.mxu1 %v2461_v2 }
 0x148   : > { %1551 = vmatpush.bf16.msra.mxu0 %v2452_v58 }
 0x149   : > { %1564 = vmatpush.bf16.msra.mxu1 %v2460_v4 }
 0x14c   : > { %1552 = vmatpush.bf16.msra.mxu0 %v2451_v59 }
 0x14d   : > { %1565 = vmatpush.bf16.msra.mxu1 %v2459_v5 }
 0x150   : > { %1553 = vmatpush.bf16.msra.mxu0 %v2450_v60 }
 0x151   : > { %1566 = vmatpush.bf16.msra.mxu1 %v2458_v6 }
 0x154   : > { %1554 = vmatpush.bf16.msra.mxu0 %v2449_v61 }
 0x155   : > { %1567 = vmatpush.bf16.msra.mxu1 %v2457_v7 }
 0x158   : > { %1555 = vmatpush.bf16.msra.mxu0 %v2448_v62 }
 0x159   : > { %1568 = vmatpush.bf16.msra.mxu1 %v2456_v10 }
 0x15c   : > { %1556 = vmatpush.bf16.msra.mxu0 %v2447_v1 }
 0x15d   : > { %1569 = vmatpush.bf16.msra.mxu1 %v2455_v12 }
 0x1a7   : > { %v1318_v11 = vpop.f32.mrf.mxu0 }
 0x1a8   : > { %v1319_v13 = vadd.f32 %v1318_v11, %v985_v9  ;;  %v1331_v14 = vpop.f32.mrf.mxu1 }
 0x1aa   : > { %v1332_v15 = vadd.f32 %v1331_v14, %v1319_v13 }
 0x1ac   : > { %v1344_v16 = vpop.f32.mrf.mxu2 }
 0x1ad   : > { %v1345_v17 = vadd.f32 %v1344_v16, %v1332_v15 }
 0x1af   : > { %v1357_v18 = vpop.f32.mrf.mxu3  ;;  %v1320_v19 = vpop.f32.mrf.mxu0 }
 0x1b0   : > { %v1358_v20 = vadd.f32 %v1357_v18, %v1345_v17  ;;  %v1333_v21 = vpop.f32.mrf.mxu1 }
 0x1b2   : > { %v1413_v22 = vmax.f32 %v1358_v20, 0.0 }
 0x1b4   : > { %v1415_v23 = vpack.c.bf16 %v1413_v22, %v1413_v22  ;;  %v1346_v24 = vpop.f32.mrf.mxu2 }
 0x1b6   : > { %1557 = vmatmul.bf16.vlgmr.msra.gmra.mxu0 %v1415_v23 }
 0x1b7   : > { %v1359_v25 = vpop.f32.mrf.mxu3 }
 0x1bc   : > { %v1370_v3 = vpop.f32.mrf.mxu0 }
 0x1bd   : > { %v1383_v26 = vpop.f32.mrf.mxu1  ;;  %v1371_v27 = vadd.f32 %v1370_v3, %v986_v63 }
 0x1bf   : > { %v1384_v28 = vadd.f32 %v1383_v26, %v1371_v27 }
 0x1c4   : > { %v1396_v29 = vpop.f32.mrf.mxu2  ;;  %v1372_v32 = vpop.f32.mrf.mxu0 }
 0x1c5   : > { %v1409_v30 = vpop.f32.mrf.mxu3  ;;  %v1397_v31 = vadd.f32 %v1396_v29, %v1384_v28  ;;  %v1385_v33 = vpop.f32.mrf.mxu1 }
 0x1c7   : > { %v1410_v34 = vadd.f32 %v1409_v30, %v1397_v31 }
 0x1c9   : > { %v1414_v35 = vmax.f32 %v1410_v34, 0.0 }
 0x1cb   : > { %v1416_v36 = vpack.c.bf16 %v1414_v35, %v1414_v35 }
 0x1cc   : > { %v1398_v37 = vpop.f32.mrf.mxu2 }
 0x1cd   : > { %v1411_v38 = vpop.f32.mrf.mxu3  ;;  %1570 = vmatmul.bf16.vlgmr.msra.gmra.mxu1 %v1416_v36 }
 0x233   : > { %v1558_v39 = vpop.f32.mrf.mxu0 }
 0x234   : > { %v1559_v44 = vadd.f32 %v2534_v42, %v1558_v39 }
 0x23b   : > { %v1560_v40 = vpop.f32.mrf.mxu0 }
 0x24a   : > { %v1571_v45 = vpop.f32.mrf.mxu1 }
 0x24b   : > { %v1572_v46 = vadd.f32 %v1571_v45, %v1559_v44 }
 0x24d   : > { %v1579_v47 = vmul.f32 %v1572_v46, %v1572_v46  ;;  %v1613_v51 = vand.u32 2147483647, %v1572_v46  ;;  %v1612_v10 = vmax.f32 %v1572_v46, 0.0 }
 0x24f   : > { %v1580_v48 = vsel %vm1577_vm3, %v1579_v47, 0.0  ;;  %v1614_v52 = vsub.f32 0.0, %v1613_v51 }
 0x250   : > { %v1581_v49 = vsel %vm876_vm0, %v1580_v48, 0.0 }
 0x251   : > { %1582 = vadd.xlane.f32.xlu0 %v1581_v49  ;;  %v1615_v54 = vmul.f32 1.442695, %v1614_v52 }
 0x252   : > { %v1573_v50 = vpop.f32.mrf.mxu1 }
 0x2c4   : > { %v1583_v53 = vpop.xlane.xlu0 %1582 }
 0x2c5   : > { %2535 = vrsqrt.f32 %v1583_v53  ;;  %vm1591_vm4 = vcmp.eq.f32.partialorder %v1583_v53, inf  ;;  %v1594_v1 = vand.u32 2147483648, %v1583_v53  ;;  %vm1593_vm5 = vcmp.eq.f32.partialorder %v1583_v53, 0.0 }
 0x2c6   : > { %2537 = vpow2.f32 %v1615_v54 }
 0x2cb   : > { %v2536_v55 = vpop.eup %2535 }
 0x2cc   : > { %v1585_v56 = vmul.f32 %v2536_v55, %v1583_v53  ;;  %v2538_v59 = vpop.eup %2537 }
 0x2cd   : > { %v1617_v62 = vadd.f32 1.0, %v2538_v59 }
 0x2ce   : > { %v1586_v57 = vmul.f32 %v2536_v55, %v1585_v56 }
 0x2cf   : > { %2539 = vlog2.f32 %v1617_v62 }
 0x2d0   : > { %v1587_v58 = vmul.f32 0.5, %v1586_v57 }
 0x2d2   : > { %v1588_v60 = vsub.f32 1.5, %v1587_v58 }
 0x2d4   : > { %v1589_v61 = vmul.f32 %v2536_v55, %v1588_v60 }
 0x2d5   : > { %v2540_v6 = vpop.eup %2539 }
 0x2d6   : > { %v1590_v0 = vmul.f32 %v1589_v61, %v1583_v53  ;;  %v1619_v8 = vmul.f32 0.6931472, %v2540_v6 }
 0x2d8   : > { %v1592_v2 = vsel %vm1591_vm4, %v1583_v53, %v1590_v0  ;;  %v1620_v12 = vadd.f32 %v1619_v8, %v1612_v10 }
 0x2d9   : > { %v1595_v4 = vsel %vm1593_vm5, %v1594_v1, %v1592_v2 }
 0x2da   : > { %v1596_v5 = vmax.f32 %v1595_v4, 1e-12  ;;  %v1621_v17 = vadd.f32 1.0, %v1620_v12 }
 0x2dc   : > { %2541 = vrcp.f32 %v1596_v5  ;;  %v1608_v13 = vand.u32 2147483648, %v1596_v5  ;;  %v1606_v15 = vand.u32 2147483647, %v1596_v5  ;;  %vm1602_vm7 = vweird.f32 %v1596_v5 }
 0x2dd   : > { %v1622_v22 = vsel %vm1578_vm9, %v1621_v17, %v1572_v46 }
 0x2de   : > { %v1609_v18 = vor.u32 1.1754944e-38, %v1608_v13  ;;  %vm1607_vm10 = vcmp.eq.f32.partialorder %v1606_v15, 8.507059e+37 }
 0x2e2   : > { %v2542_v7 = vpop.eup %2541 }
 0x2e3   : > { %v1598_v9 = vmul.f32 %v2542_v7, %v1596_v5  ;;  %vm1603_vm6 = vweird.f32 %v2542_v7 }
 0x2e4   : > { %vm1604_vm8 = vmor %vm1602_vm7, %vm1603_vm6 }
 0x2e5   : > { %v1599_v11 = vsub.f32 1.0, %v1598_v9 }
 0x2e7   : > { %v1600_v14 = vmul.f32 %v2542_v7, %v1599_v11 }
 0x2e9   : > { %v1601_v16 = vadd.f32 %v2542_v7, %v1600_v14 }
 0x2eb   : > { %v1605_v19 = vsel %vm1604_vm8, %v2542_v7, %v1601_v16 }
 0x2ec   : > { %v1610_v20 = vsel %vm1607_vm10, %v1609_v18, %v1605_v19 }
 0x2ed   : > { %v1611_v21 = vmul.f32 %v1610_v20, %v1572_v46 }
 0x2ef   : > { %v1623_v23 = vsel %vm1577_vm3, %v1611_v21, %v1622_v22 }
 0x2f0   : > { %1624 = vst [vmem:[%s3052_s7] sm:$0x3] %v1623_v23 }
 0x2f1 PF: > { %s21_s29 = sadd.s32 1, %s2657_s29   ;;  %s3061_s9 = sld [smem:[#allocation9_spill]] }
 0x2f2   : > { %p18_p4 = scmp.ge.s32.totalorder %s21_s29, 6   ;;  %s3062_s24 = smov %s2641_s25 }
 0x2f3   : > { %s3063_s25 = smov %s2645_s26  ;;  %s3064_s26 = smov %s2775_s30 }
 0x2f4   : > { %s3065_s27 = smov %s2653_s28  ;;  %20 = sbr.rel (!%p18_p4) target bundleno = 7 (0x7), region = 103 }
 0x2f7   : > { %s3066_s28 = smov %s3061_s9 }
 0x2f9   :  { %1644 = vsyncpa [#allocation4], 1 }
 0x2fa   :  { %1646 = vsyncpa [#allocation4 + $0x1], 1 }
 0x2fb   :  { %1647 = vsyncpa [#allocation6], 1 }

</bundles_post_ra>
